<compile_context>
chip_gen: v7x
topology: tpu7x:2x2x1
jax: 0.10.0
libtpu: 0.0.40
codegen_flags: <defaults>
</compile_context>

<pallas_src>
import functools

import jax
import jax.numpy as jnp
from jax.experimental import pallas as pl
from jax.experimental.pallas import tpu as pltpu

CPAD = 128  # classifier output channels padded to one lane width


# ----------------------------------------------------------------------------
# Kernel: (bias + ReLU + flattened classifier matmul + bias) in one shot.
# ----------------------------------------------------------------------------
def fused_mlp_kernel(hpre_ref, w2_ref, b1_ref, b2_ref, o_ref):
    """Single grid step over the whole (tiny-B) batch.

    hpre_ref: (B, S*H) f32  gathered folded-embedding rows (pre-bias, pre-ReLU)
    w2_ref:   (S*H, Cpad) bf16  classifier weight (lane-padded)
    b1_ref:   (1, S*H) f32  hidden bias tiled across the S positions
    b2_ref:   (1, Cpad) f32 classifier bias (lane-padded)
    o_ref:    (B, Cpad) f32 logits
    """
    h = jnp.maximum(hpre_ref[...] + b1_ref[...], 0.0)              # (B, K) f32
    o_ref[...] = (
        jnp.dot(h.astype(w2_ref.dtype), w2_ref[...],               # bf16 MXU path
                preferred_element_type=jnp.float32)                # f32 accumulate
        + b2_ref[...])


def fused_forward(hpre, w2, b1_full, b2):
    B, K = hpre.shape
    _, Cpad = w2.shape

    cost = pl.CostEstimate(
        flops=2 * B * K * Cpad + 2 * B * K,
        transcendentals=0,
        bytes_accessed=(hpre.size * 4 + w2.size * 2 + b1_full.size * 4
                        + b2.size * 4 + B * Cpad * 4),
    )

    return pl.pallas_call(
        fused_mlp_kernel,
        out_shape=jax.ShapeDtypeStruct((B, Cpad), jnp.float32),
        grid=(1,),  # single step: w2 (2.36 MB bf16) fits VMEM on all generations
        in_specs=[
            pl.BlockSpec((B, K), lambda i: (0, 0)),        # hpre
            pl.BlockSpec((K, Cpad), lambda i: (0, 0)),     # w2 (bf16)
            pl.BlockSpec((1, K), lambda i: (0, 0)),        # b1 tiled
            pl.BlockSpec((1, Cpad), lambda i: (0, 0)),     # b2
        ],
        out_specs=pl.BlockSpec((B, Cpad), lambda i: (0, 0)),
        compiler_params=pltpu.CompilerParams(
            dimension_semantics=("arbitrary",),
        ),
        cost_estimate=cost,
    )(hpre, w2, b1_full, b2)


@functools.partial(jax.jit, static_argnums=(2,))
def intent_dl_forward(token_type_ids, params, n_classes):
    B, S = token_type_ids.shape
    table_h = params["table_h"]                        # (n_emb, H) = emb @ w1
    H = table_h.shape[1]

    # Embedding lookup (rows already folded through Linear(E->H)); Dropout(0.1)
    # is identity in eval.  Done with jnp.take outside the kernel to avoid the
    # padded in-kernel gather (the one real v7x VMEM-scaling hazard).
    hpre = jnp.take(table_h, token_type_ids.reshape(-1), axis=0)   # (B*S, H)
    hpre = hpre.reshape(B, S * H)                      # the module's .view(B, S*H)

    logits_pad = fused_forward(hpre, params["w2"], params["b1_full"], params["b2"])
    return logits_pad[:, :n_classes]


# ----------------------------------------------------------------------------
# Deterministic parameter initialization (synthetic, matches module shapes)
# ----------------------------------------------------------------------------
def init_params(key, n_embeddings, n_embedding_dim, padding_idx,
                n_hidden_layer_neurons, n_classes, seq_len):
    k0, k1, k2, k3, k4 = jax.random.split(key, 5)
    E, H, C = n_embedding_dim, n_hidden_layer_neurons, n_classes
    K = seq_len * H
    assert K == 9216, "classifier is hard-wired to Linear(9216, n_classes)"

    emb = jax.random.normal(k0, (n_embeddings, E), jnp.float32) * 0.02
    emb = emb.at[padding_idx].set(0.0)              # nn.Embedding padding_idx row
    w1 = jax.random.normal(k1, (E, H), jnp.float32) * (1.0 / jnp.sqrt(E))
    b1 = jax.random.normal(k2, (1, H), jnp.float32) * 0.01
    w2_valid = jax.random.normal(k3, (K, C), jnp.float32) * (1.0 / jnp.sqrt(K))
    b2_valid = jax.random.normal(k4, (1, C), jnp.float32) * 0.01

    # Fold nn.Embedding @ nn.Linear(E->H).weight into a single lookup table.
    # padding_idx row stays zero (0 @ w1 == 0); b1 + ReLU are applied AFTER the
    # lookup (inside the kernel), so eval-mode semantics are preserved.
    table_h = jnp.dot(emb, w1, precision=jax.lax.Precision.HIGHEST)  # (n_emb, H)

    # Hidden bias tiled across sequence positions -> applies to the flat (B, S*H).
    b1_full = jnp.tile(b1, (1, seq_len))                             # (1, S*H)

    # bf16 classifier weights: halves the only large HBM transfer; f32 accumulate.
    # TODO(synk): generation-aware storage (int8+scales on v5e/v6e, fp8 on v7x).
    w2 = (jnp.zeros((K, CPAD), jnp.float32).at[:, :C].set(w2_valid)
          ).astype(jnp.bfloat16)
    b2 = jnp.zeros((1, CPAD), jnp.float32).at[:, :C].set(b2_valid)

    # TODO(synk): self.linear_layer (n_hidden_layer x Linear(512, 9216)) is
    # never used in forward(); its parameters are intentionally not created.
    return {"emb": emb, "w1": w1, "b1": b1,                  # kept for reference path
            "table_h": table_h, "b1_full": b1_full, "w2": w2, "b2": b2}


# ----------------------------------------------------------------------------
# Pure-JAX reference (un-folded path, same bf16 classifier weights)
# ----------------------------------------------------------------------------
def reference_forward(token_type_ids, params, n_classes):
    B, S = token_type_ids.shape
    emb = jnp.take(params["emb"], token_type_ids.reshape(-1), axis=0)   # (B*S, E)
    h = jnp.maximum(
        jnp.dot(emb, params["w1"], precision=jax.lax.Precision.HIGHEST)
        + params["b1"], 0.0)                                            # (B*S, H)
    flat = h.reshape(B, -1)
    logits = jnp.dot(flat.astype(jnp.bfloat16), params["w2"],
                     preferred_element_type=jnp.float32) + params["b2"]
    return logits[:, :n_classes]


if __name__ == "__main__":
    # Small config consistent with the module: seq*hidden must be 9216.
    n_embeddings = 100
    n_embedding_dim = 64
    padding_idx = 0
    n_hidden_layer = 2              # linear_layer stack is dead code in forward()
    n_hidden_layer_neurons = 512
    n_classes = 8
    seq_len = 18                    # 18 * 512 = 9216
    batch = 2

    key = jax.random.PRNGKey(0)
    k_params, k_tok = jax.random.split(key)

    params = init_params(k_params, n_embeddings, n_embedding_dim, padding_idx,
                         n_hidden_layer_neurons, n_classes, seq_len)
    token_type_ids = jax.random.randint(
        k_tok, (batch, seq_len), 0, n_embeddings, dtype=jnp.int32)

    out = intent_dl_forward(token_type_ids, params, n_classes)
    out = jax.block_until_ready(out)

    ref = reference_forward(token_type_ids, params, n_classes)
    assert out.shape == (batch, n_classes), out.shape
    max_err = jnp.max(jnp.abs(out - ref))
    assert jnp.allclose(out, ref, atol=1e-3, rtol=1e-2), (
        f"mismatch vs reference: max abs err {max_err}")

    print("KERNEL_OK")
</pallas_src>

<mosaic_0001>
module attributes {stable_mosaic.version = 11 : i64} {
  func.func @fused_mlp_kernel(%arg0: i32, %arg1: memref<2x9216xf32, #tpu.memory_space<vmem>>, %arg2: memref<9216x128xbf16, #tpu.memory_space<vmem>>, %arg3: memref<1x9216xf32, #tpu.memory_space<vmem>>, %arg4: memref<1x128xf32, #tpu.memory_space<vmem>>, %arg5: memref<2x128xf32, #tpu.memory_space<vmem>>) attributes {dimension_semantics = [#tpu.dimension_semantics<arbitrary>], iteration_bounds = array<i64: 1>, scalar_prefetch = 0 : i64, scratch_operands = 0 : i64, tpu.core_type = #tpu.core_type<tc>, window_params = [{pipeline_mode = #tpu.pipeline_mode<synchronous>, transform_indices = @transform_0, window_bounds = array<i64: 2, 9216>}, {pipeline_mode = #tpu.pipeline_mode<synchronous>, transform_indices = @transform_1, window_bounds = array<i64: 9216, 128>}, {pipeline_mode = #tpu.pipeline_mode<synchronous>, transform_indices = @transform_2, window_bounds = array<i64: 1, 9216>}, {pipeline_mode = #tpu.pipeline_mode<synchronous>, transform_indices = @transform_3, window_bounds = array<i64: 1, 128>}, {pipeline_mode = #tpu.pipeline_mode<synchronous>, transform_indices = @transform_4, window_bounds = array<i64: 2, 128>}]} {
    %c0 = arith.constant 0 : index
    %c0_0 = arith.constant 0 : index
    %0 = vector.load %arg1[%c0, %c0_0] : memref<2x9216xf32, #tpu.memory_space<vmem>>, vector<2x9216xf32>
    %c0_1 = arith.constant 0 : index
    %c0_2 = arith.constant 0 : index
    %1 = vector.load %arg3[%c0_1, %c0_2] : memref<1x9216xf32, #tpu.memory_space<vmem>>, vector<1x9216xf32>
    %2 = vector.broadcast %1 : vector<1x9216xf32> to vector<2x9216xf32>
    %3 = arith.addf %0, %2 : vector<2x9216xf32>
    %cst = arith.constant 0.000000e+00 : f32
    %4 = vector.broadcast %cst : f32 to vector<2x9216xf32>
    %5 = arith.maximumf %3, %4 : vector<2x9216xf32>
    %6 = arith.truncf %5 : vector<2x9216xf32> to vector<2x9216xbf16>
    %c0_3 = arith.constant 0 : index
    %c0_4 = arith.constant 0 : index
    %7 = vector.load %arg2[%c0_3, %c0_4] : memref<9216x128xbf16, #tpu.memory_space<vmem>>, vector<9216x128xbf16>
    %cst_5 = arith.constant dense<0.000000e+00> : vector<2x128xf32>
    %8 = tpu.matmul %6, %7, %cst_5 {dimension_numbers = #tpu.dot_dimension_numbers<[1], [0], [0], [1], [0, 0, 1, 1], [], []>} : vector<2x9216xbf16>, vector<9216x128xbf16>, vector<2x128xf32> -> vector<2x128xf32>
    %c0_6 = arith.constant 0 : index
    %c0_7 = arith.constant 0 : index
    %9 = vector.load %arg4[%c0_6, %c0_7] : memref<1x128xf32, #tpu.memory_space<vmem>>, vector<1x128xf32>
    %10 = vector.broadcast %9 : vector<1x128xf32> to vector<2x128xf32>
    %11 = arith.addf %8, %10 : vector<2x128xf32>
    %c0_8 = arith.constant 0 : index
    %c0_9 = arith.constant 0 : index
    %12 = vector.load %arg5[%c0_8, %c0_9] : memref<2x128xf32, #tpu.memory_space<vmem>>, vector<2x128xf32>
    tpu.vector_store %arg5[%c0_8, %c0_9], %11 {strides = array<i32>} : memref<2x128xf32, #tpu.memory_space<vmem>>, vector<2x128xf32>,
    return
  }
  func.func @transform_0(%arg0: i32) -> (i32, i32) {
    %c0_i32 = arith.constant 0 : i32
    %c0_i32_0 = arith.constant 0 : i32
    %c0_i32_1 = arith.constant 0 : i32
    return %c0_i32, %c0_i32_0 : i32, i32
  }
  func.func @transform_1(%arg0: i32) -> (i32, i32) {
    %c0_i32 = arith.constant 0 : i32
    %c0_i32_0 = arith.constant 0 : i32
    %c0_i32_1 = arith.constant 0 : i32
    return %c0_i32, %c0_i32_0 : i32, i32
  }
  func.func @transform_2(%arg0: i32) -> (i32, i32) {
    %c0_i32 = arith.constant 0 : i32
    %c0_i32_0 = arith.constant 0 : i32
    %c0_i32_1 = arith.constant 0 : i32
    return %c0_i32, %c0_i32_0 : i32, i32
  }
  func.func @transform_3(%arg0: i32) -> (i32, i32) {
    %c0_i32 = arith.constant 0 : i32
    %c0_i32_0 = arith.constant 0 : i32
    %c0_i32_1 = arith.constant 0 : i32
    return %c0_i32, %c0_i32_0 : i32, i32
  }
  func.func @transform_4(%arg0: i32) -> (i32, i32) {
    %c0_i32 = arith.constant 0 : i32
    %c0_i32_0 = arith.constant 0 : i32
    %c0_i32_1 = arith.constant 0 : i32
    return %c0_i32, %c0_i32_0 : i32, i32
  }
}

</mosaic_0001>

<bundles_post_ra>
// kernel: intent_dl_forward.1
= control target key start
LH: loop header
LB: loop body
LE: loop exit
PB: predicated region body
PF: predicated region fallthrough
CT: control target
= control target key end

     0   :  { %9 = vsyncpa [#allocation3], 0  ;;  %s9739_s0 = inlined_call_operand.vmem [shape: f32[2,9216], index: 0, kind: input, shape index: {}]   ;;  %s9740_s1 = inlined_call_operand.hbm [shape: bf16[9216,128], index: 1, kind: input, shape index: {}]   ;;  %s9741_s2 = inlined_call_operand.hbm [shape: f32[1,9216], index: 2, kind: input, shape index: {}]   ;;  %s9742_s3 = inlined_call_operand.hbm [shape: f32[1,128], index: 3, kind: input, shape index: {}]   ;;  %s9743_s4 = inlined_call_operand.hbm [shape: f32[2,128], index: 4, kind: output, shape index: {}]  }
   0x1   :  { %10 = vsyncpa [#allocation6], 0 }
   0x2   :  { %11 = vsyncpa [#allocation4], 0  ;;  %s9326_s15 = smov [#allocation5]   ;;  %s9327_s17 = smov [#allocation2]  }
   0x3   :  { %s32_s16 = sshll.u32 %s9326_s15, 4  ;;  %s19_s18 = sshll.u32 %s9327_s17, 4  ;;  %s33_s16 = int_to_ptr.vmem [resolvable:$true] %s32_s16  ;;  %s9358_s18 = int_to_ptr.vmem [resolvable:$true] %s19_s18 }
   0x4   :  { %s9232_s21 = scalar_lea.hbm %s9741_s2, 1152 }
   0x5   :  { %p9233_p0 = scmp.ne.s32.totalorder %s9741_s2, %s9232_s21  ;;  %p9236_p1 = scmp.lt.u32.totalorder %s9232_s21, %s9741_s2 }
   0x7   :  { %p9238_p2 = pnand %p9236_p1, %p9233_p0 }
   0x9   :  { %9241 = shalt.err (!%p9238_p2)
}
   0xa   :  { %s9242_s26 = scalar_lea.vmem %s33_s16, 1152  ;;  %p9247_p4 = scmp.lt.s32.totalorder %s33_s16, %s33_s16 }
   0xb   :  { %p9243_p3 = scmp.ne.s32.totalorder %s33_s16, %s9242_s26  ;;  %p9248_p5 = scmp.lt.s32.totalorder %s9242_s26, %s9242_s26 }
   0xd   :  { %p9249_p6 = por %p9248_p5, %p9247_p4 }
   0xf   :  { %p9250_p7 = pnand %p9249_p6, %p9243_p3 }
  0x11   :  { %9253 = shalt.err (!%p9250_p7)
}
  0x12   :  { %35 = dma.hbm_to_vmem [thread:$0]  %s9741_s2, 1152, %s33_s16, [#allocation6]  }
  0x13   :  { %s9254_s5 = scalar_lea.hbm %s9740_s1, 73728 }
  0x14   :  { %p9255_p8 = scmp.ne.s32.totalorder %s9740_s1, %s9254_s5  ;;  %p9258_p9 = scmp.lt.u32.totalorder %s9254_s5, %s9740_s1 }
  0x16   :  { %p9260_p10 = pnand %p9258_p9, %p9255_p8 }
  0x18   :  { %9263 = shalt.err (!%p9260_p10)
}
  0x19   :  { %s9264_s10 = scalar_lea.vmem %s9358_s18, 73728  ;;  %p9269_p12 = scmp.lt.s32.totalorder %s9358_s18, %s9358_s18 }
  0x1a   :  { %p9265_p11 = scmp.ne.s32.totalorder %s9358_s18, %s9264_s10  ;;  %p9270_p13 = scmp.lt.s32.totalorder %s9264_s10, %s9264_s10 }
  0x1c   :  { %p9271_p0 = por %p9270_p13, %p9269_p12 }
  0x1e   :  { %p9272_p1 = pnand %p9271_p0, %p9265_p11 }
  0x20   :  { %9275 = shalt.err (!%p9272_p1)
}
  0x21   :  { %s9328_s2 = smov 64   ;;  %s9329_s11 = smov 4  }
  0x22   :  { %25 = dma.hbm_to_vmem [thread:$0]  %s9740_s1, 73728, %s9358_s18, [#allocation3], %s9328_s2, %s9328_s2, %s9329_s11  }
  0x23   :  { %s9330_s14 = smov [#allocation7]   ;;  %s9276_s19 = scalar_lea.hbm %s9742_s3, 16 }
  0x24   :  { %s42_s15 = sshll.u32 %s9330_s14, 4  ;;  %p9277_p2 = scmp.ne.s32.totalorder %s9742_s3, %s9276_s19  ;;  %s43_s15 = int_to_ptr.vmem [resolvable:$true] %s42_s15 }
  0x25   :  { %p9280_p3 = scmp.lt.u32.totalorder %s9276_s19, %s9742_s3 }
  0x27   :  { %p9282_p4 = pnand %p9280_p3, %p9277_p2 }
  0x29   :  { %9285 = shalt.err (!%p9282_p4)
}
  0x2a   :  { %s9286_s24 = scalar_lea.vmem %s43_s15, 16  ;;  %s9290_s1 = scalar_lea.vmem %s43_s15, 32 }
  0x2b   :  { %p9287_p5 = scmp.ne.s32.totalorder %s43_s15, %s9286_s24  ;;  %p9291_p6 = scmp.lt.s32.totalorder %s43_s15, %s43_s15 }
  0x2c   :  { %p9292_p7 = scmp.lt.s32.totalorder %s9290_s1, %s9286_s24 }
  0x2e   :  { %p9293_p8 = por %p9292_p7, %p9291_p6 }
  0x30   :  { %p9294_p9 = pnand %p9293_p8, %p9287_p5 }
  0x32   :  { %9297 = shalt.err (!%p9294_p9)
}
  0x33   :  { %45 = dma.hbm_to_vmem [thread:$0]  %s9742_s3, 16, %s43_s15, [#allocation6]  }
  0x34   :  { %9320 = dma.done.wait [#allocation3], 73728  }
  0x35   :  { %9321 = vsyncadd [#allocation3], 4294893568 }
  0x36   :  { %9322 = dma.done.wait [#allocation6], 1168  }
  0x37   :  { %9323 = vsyncadd [#allocation6], 4294966128  ;;  %v8656_v0 = vld [vmem:[#allocation2 + $0x40] sm:$0xff]   ;;  %v8660_v4 = vld [vmem:[#allocation2 + $0x48] sm:$0xff]   ;;  %v92_v19 = vlaneseq  ;;  %v9331_v27 = vmov 1983009808  }
  0x38   :  { %v8657_v1 = vld [vmem:[#allocation2 + $0xc0] sm:$0xff]   ;;  %7857 = vmatprep.subr.bf16.mxu0 %v8656_v0  ;;  %v8661_v5 = vld [vmem:[#allocation2 + $0xc8] sm:$0xff]   ;;  %v8664_v8 = vld [vmem:[#allocation2 + $0x50] sm:$0xff]   ;;  %v383_v28 = vunpack.c.l.s4 %v9331_v27 }
  0x39   :  { %v8658_v2 = vld [vmem:[#allocation2] sm:$0xff]   ;;  %7879 = vmatprep.subr.bf16.mxu1 %v8657_v1  ;;  %v8662_v6 = vld [vmem:[#allocation2 + $0x8] sm:$0xff]   ;;  %v8665_v9 = vld [vmem:[#allocation2 + $0xd0] sm:$0xff]   ;;  %v93_v24 = vshrl.u32 %v92_v19, 7 }
  0x3a   :  { %v8659_v3 = vld [vmem:[#allocation2 + $0x80] sm:$0xff]   ;;  %7858 = vmatpush3.bf16.msra.mxu0 %v8658_v2  ;;  %v8663_v7 = vld [vmem:[#allocation2 + $0x88] sm:$0xff]   ;;  %v8666_v10 = vld [vmem:[#allocation2 + $0x10] sm:$0xff]   ;;  %v384_v36 = vunpack.c.0.s8 %v383_v28 }
  0x3b   :  { %7880 = vmatpush3.bf16.msra.mxu1 %v8659_v3  ;;  %7859 = vmatprep.subr.bf16.mxu0 %v8660_v4  ;;  %v8667_v11 = vld [vmem:[#allocation2 + $0x90] sm:$0xff]   ;;  %v8668_v12 = vld [vmem:[#allocation2 + $0x58] sm:$0xff]   ;;  %v8672_v16 = vld [vmem:[#allocation2 + $0x60] sm:$0xff]   ;;  %v9401_v31 = vsub.s32 0, %v93_v24  ;;  %v9403_v33 = vsub.s32 1, %v93_v24  ;;  %v9405_v35 = vsub.s32 2, %v93_v24 }
  0x3c   :  { %7881 = vmatprep.subr.bf16.mxu1 %v8661_v5  ;;  %v8669_v13 = vld [vmem:[#allocation2 + $0xd8] sm:$0xff]   ;;  %v8673_v17 = vld [vmem:[#allocation2 + $0xe0] sm:$0xff]   ;;  %v8676_v21 = vld [vmem:[#allocation2 + $0x68] sm:$0xff]   ;;  %v9407_v38 = vsub.s32 3, %v93_v24  ;;  %v9409_v42 = vsub.s32 %v384_v36, %v93_v24  ;;  %v9420_v57 = vsub.s32 4, %v93_v24  ;;  %v9422_v58 = vsub.s32 5, %v93_v24 }
  0x3d   :  { %v8670_v14 = vld [vmem:[#allocation2 + $0x18] sm:$0xff]   ;;  %v8674_v18 = vld [vmem:[#allocation2 + $0x20] sm:$0xff]   ;;  %v8677_v22 = vld [vmem:[#allocation2 + $0xe8] sm:$0xff]   ;;  %v9425_v61 = vsub.s32 6, %v93_v24  ;;  %v9427_v62 = vsub.s32 7, %v93_v24 }
  0x3e   :  { %7860 = vmatpush3.bf16.msra.mxu0 %v8662_v6  ;;  %v8671_v15 = vld [vmem:[#allocation2 + $0x98] sm:$0xff]   ;;  %v8675_v20 = vld [vmem:[#allocation2 + $0xa0] sm:$0xff]   ;;  %v8678_v23 = vld [vmem:[#allocation2 + $0x28] sm:$0xff]  }
  0x3f   :  { %7882 = vmatpush3.bf16.msra.mxu1 %v8663_v7  ;;  %7861 = vmatprep.subr.bf16.mxu0 %v8664_v8  ;;  %v8679_v25 = vld [vmem:[#allocation2 + $0xa8] sm:$0xff]   ;;  %v8680_v26 = vld [vmem:[#allocation2 + $0x70] sm:$0xff]   ;;  %v8684_v34 = vld [vmem:[#allocation2 + $0x78] sm:$0xff]  }
  0x40   :  { %7883 = vmatprep.subr.bf16.mxu1 %v8665_v9  ;;  %v8681_v29 = vld [vmem:[#allocation2 + $0xf0] sm:$0xff]   ;;  %v8685_v37 = vld [vmem:[#allocation2 + $0xf8] sm:$0xff]   ;;  %v74_v41 = vld [vmem:[#allocation5] sm:$0xff] }
  0x41   :  { %v8682_v30 = vld [vmem:[#allocation2 + $0x30] sm:$0xff]   ;;  %v8686_v39 = vld [vmem:[#allocation2 + $0x38] sm:$0xff]   ;;  %v95_v43 = vrot.slane %v74_v41, %v9401_v31  ;;  %v99_v44 = vrot.slane %v74_v41, %v9403_v33  ;;  %v103_v45 = vrot.slane %v74_v41, %v9405_v35  ;;  %v107_v46 = vrot.slane %v74_v41, %v9407_v38  ;;  %v8688_v47 = vld [vmem:[#allocation2 + $0x140] sm:$0xff]  }
  0x42   :  { %7862 = vmatpush3.bf16.msra.mxu0 %v8666_v10  ;;  %v8683_v32 = vld [vmem:[#allocation2 + $0xb0] sm:$0xff]   ;;  %v8687_v40 = vld [vmem:[#allocation2 + $0xb8] sm:$0xff]   ;;  %v8689_v48 = vld [vmem:[#allocation2 + $0x1c0] sm:$0xff]   ;;  %v111_v3 = vrot.slane %v74_v41, %v9420_v57  ;;  %v115_v4 = vrot.slane %v74_v41, %v9422_v58  ;;  %v119_v8 = vrot.slane %v74_v41, %v9425_v61  ;;  %v123_v9 = vrot.slane %v74_v41, %v9427_v62 }
  0x43   :  { %7884 = vmatpush3.bf16.msra.mxu1 %v8667_v11  ;;  %7863 = vmatprep.subr.bf16.mxu0 %v8668_v12  ;;  %v380_v49 = vcombine.low %v95_v43, %v99_v44  ;;  %v381_v50 = vcombine.low %v103_v45, %v107_v46  ;;  %v56_v53 = vld [vmem:[%s9739_s0] sm:$0xff]  ;;  %v8692_v11 = vld [vmem:[#allocation2 + $0x148] sm:$0xff]   ;;  %v8697_v19 = vld [vmem:[#allocation2 + $0x1d0] sm:$0xff]  }
  0x44   :  { %7885 = vmatprep.subr.bf16.mxu1 %v8669_v13  ;;  %v8690_v2 = vld [vmem:[#allocation2 + $0x100] sm:$0xff]   ;;  %v8693_v13 = vld [vmem:[#allocation2 + $0x1c8] sm:$0xff]   ;;  %v8700_v24 = vld [vmem:[#allocation2 + $0x158] sm:$0xff]  }
  0x45   :  { %v388_v51 = vrot.slane %v380_v49, %v9409_v42  ;;  %v395_v52 = vrot.slane %v381_v50, %v9409_v42  ;;  %v8691_v7 = vld [vmem:[#allocation2 + $0x180] sm:$0xff]   ;;  %v8703_v27 = vld [vmem:[#allocation2 + $0x198] sm:$0xff]   ;;  %v8710_v43 = vld [vmem:[#allocation2 + $0x128] sm:$0xff]  }
  0x46   :  { %7864 = vmatpush3.bf16.msra.mxu0 %v8670_v14  ;;  %v8694_v14 = vld [vmem:[#allocation2 + $0x108] sm:$0xff]   ;;  %v8707_v36 = vld [vmem:[#allocation2 + $0x1a0] sm:$0xff]  }
  0x47   :  { %7886 = vmatpush3.bf16.msra.mxu1 %v8671_v15  ;;  %7865 = vmatprep.subr.bf16.mxu0 %v8672_v16  ;;  %v396_v54 = vcombine.low %v388_v51, %v395_v52  ;;  %v8695_v15 = vld [vmem:[#allocation2 + $0x188] sm:$0xff]   ;;  %v397_v16 = vcombine.low %v111_v3, %v115_v4  ;;  %v8714_v51 = vld [vmem:[#allocation2 + $0x130] sm:$0xff]   ;;  %v8722_v3 = vld [vmem:[#allocation2 + $0x200] sm:$0xff]  }
  0x48   :  { %7887 = vmatprep.subr.bf16.mxu1 %v8673_v17  ;;  %v398_v17 = vcombine.low %v119_v8, %v123_v9  ;;  %v8711_v44 = vld [vmem:[#allocation2 + $0x1a8] sm:$0xff]   ;;  %v8715_v52 = vld [vmem:[#allocation2 + $0x1b0] sm:$0xff]   ;;  %v8723_v4 = vld [vmem:[#allocation2 + $0x280] sm:$0xff]  }
  0x49   :  { %v704_v55 = vadd.f32 %v396_v54, %v56_v53  ;;  %v8726_v8 = vld [vmem:[#allocation2 + $0x208] sm:$0xff]  }
  0x4a   :  { %7866 = vmatpush3.bf16.msra.mxu0 %v8674_v18  ;;  %v8696_v18 = vld [vmem:[#allocation2 + $0x150] sm:$0xff]   ;;  %v8727_v9 = vld [vmem:[#allocation2 + $0x288] sm:$0xff]  }
  0x4b   :  { %7888 = vmatpush3.bf16.msra.mxu1 %v8675_v20  ;;  %7867 = vmatprep.subr.bf16.mxu0 %v8676_v21  ;;  %v722_v56 = vmax.f32 %v704_v55, 0.0  ;;  %v8698_v20 = vld [vmem:[#allocation2 + $0x110] sm:$0xff]   ;;  %v8716_v55 = vld [vmem:[#allocation2 + $0x178] sm:$0xff]  }
  0x4c   :  { %7889 = vmatprep.subr.bf16.mxu1 %v8677_v22  ;;  %v8699_v21 = vld [vmem:[#allocation2 + $0x190] sm:$0xff]   ;;  %v405_v22 = vrot.slane %v397_v16, %v9409_v42  ;;  %v8734_v16 = vld [vmem:[#allocation2 + $0x218] sm:$0xff]  }
  0x4d   :  { %v765_v59 = vrot.slane %v722_v56, %v9409_v42  ;;  %v758_v60 = vcombine.high %v722_v56, %v722_v56  ;;  %v8717_v56 = vld [vmem:[#allocation2 + $0x1f8] sm:$0xff]  }
  0x4e   :  { %7868 = vmatpush3.bf16.msra.mxu0 %v8678_v23  ;;  %v412_v23 = vrot.slane %v398_v17, %v9409_v42  ;;  %v8735_v17 = vld [vmem:[#allocation2 + $0x298] sm:$0xff]  }
  0x4f   :  { %7890 = vmatpush3.bf16.msra.mxu1 %v8679_v25  ;;  %7869 = vmatprep.subr.bf16.mxu0 %v8680_v26  ;;  %v773_v63 = vcombine.high %v765_v59, %v765_v59  ;;  %v772_v0 = vrot.slane %v758_v60, %v9409_v42  ;;  %v1136_v1 = vpack.c.bf16 %v765_v59, %v765_v59  ;;  %v8701_v25 = vld [vmem:[#allocation2 + $0x1d8] sm:$0xff]  }
  0x50   :  { %7891 = vmatprep.subr.bf16.mxu1 %v8681_v29  ;;  %v8702_v26 = vld [vmem:[#allocation2 + $0x118] sm:$0xff]   ;;  %v413_v28 = vcombine.low %v405_v22, %v412_v23  ;;  %v8704_v29 = vld [vmem:[#allocation2 + $0x160] sm:$0xff]   ;;  %v9441_v22 = vld [vmem:[#allocation5 + $0x8] sm:$0xff] }
  0x51   :  { %v1137_v5 = vpack.c.bf16 %v773_v63, %v773_v63  ;;  %v774_v6 = vcombine.high %v772_v0, %v772_v0  ;;  %v1138_v10 = vpack.c.bf16 %v772_v0, %v772_v0  ;;  %v8718_v60 = vld [vmem:[#allocation2 + $0x138] sm:$0xff]   ;;  %v8720_v0 = vld [vmem:[#allocation2 + $0x240] sm:$0xff]   ;;  %v8740_v23 = vld [vmem:[#allocation2 + $0x268] sm:$0xff]  }
  0x52   :  { %7870 = vmatpush3.bf16.msra.mxu0 %v8682_v30  ;;  %v8705_v30 = vld [vmem:[#allocation2 + $0x1e0] sm:$0xff]   ;;  %v8719_v63 = vld [vmem:[#allocation2 + $0x1b8] sm:$0xff]  }
  0x53   :  { %7892 = vmatpush3.bf16.msra.mxu1 %v8683_v32  ;;  %7871 = vmatprep.subr.bf16.mxu0 %v8684_v34  ;;  %v1139_v12 = vpack.c.bf16 %v774_v6, %v774_v6  ;;  %v8706_v32 = vld [vmem:[#allocation2 + $0x120] sm:$0xff]   ;;  %v57_v34 = vld [vmem:[%s9739_s0 + $0x8] sm:$0xff] }
  0x54   :  { %7893 = vmatprep.subr.bf16.mxu1 %v8685_v37  ;;  %5855 = vmatprep.mubr.bf16.mxu0 %v1137_v5  ;;  %v705_v37 = vadd.f32 %v413_v28, %v57_v34  ;;  %v8724_v6 = vld [vmem:[#allocation2 + $0x248] sm:$0xff]  }
  0x55   :  { %5895 = vmatprep.mubr.bf16.mxu1 %v1139_v12  ;;  %v8730_v12 = vld [vmem:[#allocation2 + $0x210] sm:$0xff]   ;;  %v8741_v28 = vld [vmem:[#allocation2 + $0x2e8] sm:$0xff]  }
  0x56   :  { %7872 = vmatpush3.bf16.msra.mxu0 %v8686_v39  ;;  %v8708_v39 = vld [vmem:[#allocation2 + $0x168] sm:$0xff]   ;;  %v723_v41 = vmax.f32 %v705_v37, 0.0 }
  0x57   :  { %7894 = vmatpush3.bf16.msra.mxu1 %v8687_v40  ;;  %7901 = vmatprep.subr.bf16.mxu0 %v8688_v47  ;;  %v8709_v40 = vld [vmem:[#allocation2 + $0x1e8] sm:$0xff]   ;;  %v8712_v47 = vld [vmem:[#allocation2 + $0x170] sm:$0xff]  }
  0x58   :  { %7923 = vmatprep.subr.bf16.mxu1 %v8689_v48  ;;  %v782_v45 = vrot.slane %v723_v41, %v9409_v42  ;;  %v775_v46 = vcombine.high %v723_v41, %v723_v41  ;;  %v8713_v48 = vld [vmem:[#allocation2 + $0x1f0] sm:$0xff]   ;;  %v8743_v34 = vld [vmem:[#allocation2 + $0x2a8] sm:$0xff]  }
  0x59   :  { %5856 = vmatmul.mubr.bf16.vlgmr.msra.gmra.mrb[0].mxu0 %v1136_v1  ;;  %v8721_v1 = vld [vmem:[#allocation2 + $0x2c0] sm:$0xff]   ;;  %v8745_v41 = vld [vmem:[#allocation2 + $0x2f0] sm:$0xff]  }
  0x5a   :  { %7902 = vmatpush3.bf16.msra.mxu0 %v8690_v2  ;;  %5896 = vmatmul.mubr.bf16.vlgmr.msra.gmra.mrb[0].mxu1 %v1138_v10  ;;  %v790_v49 = vcombine.high %v782_v45, %v782_v45  ;;  %v789_v50 = vrot.slane %v775_v46, %v9409_v42  ;;  %v1140_v2 = vpack.c.bf16 %v782_v45, %v782_v45  ;;  %v8728_v10 = vld [vmem:[#allocation2 + $0x250] sm:$0xff]   ;;  %v8748_v45 = vld [vmem:[#allocation2 + $0x278] sm:$0xff]  }
  0x5b   :  { %7903 = vmatprep.subr.bf16.mxu0 %v8692_v11  ;;  %7924 = vmatpush3.bf16.msra.mxu1 %v8691_v7  ;;  %v8725_v7 = vld [vmem:[#allocation2 + $0x2c8] sm:$0xff]   ;;  %v8729_v11 = vld [vmem:[#allocation2 + $0x2d0] sm:$0xff]  }
  0x5c   :  { %7925 = vmatprep.subr.bf16.mxu1 %v8693_v13  ;;  %v1141_v53 = vpack.c.bf16 %v790_v49, %v790_v49  ;;  %v791_v54 = vcombine.high %v789_v50, %v789_v50  ;;  %v1142_v5 = vpack.c.bf16 %v789_v50, %v789_v50  ;;  %v8731_v13 = vld [vmem:[#allocation2 + $0x290] sm:$0xff]   ;;  %v8750_v50 = vld [vmem:[#allocation2 + $0x238] sm:$0xff]  }
  0x5e   :  { %7904 = vmatpush3.bf16.msra.mxu0 %v8694_v14  ;;  %5935 = vmatprep.mubr.bf16.mxu0 %v1141_v53  ;;  %v1143_v59 = vpack.c.bf16 %v791_v54, %v791_v54  ;;  %v8732_v14 = vld [vmem:[#allocation2 + $0x258] sm:$0xff]   ;;  %v8752_v53 = vld [vmem:[#allocation2 + $0x340] sm:$0xff]  }
  0x5f   :  { %7905 = vmatprep.subr.bf16.mxu0 %v8696_v18  ;;  %7926 = vmatpush3.bf16.msra.mxu1 %v8695_v15  ;;  %v8733_v15 = vld [vmem:[#allocation2 + $0x2d8] sm:$0xff]   ;;  %v8736_v18 = vld [vmem:[#allocation2 + $0x260] sm:$0xff]  }
  0x60   :  { %7927 = vmatprep.subr.bf16.mxu1 %v8697_v19  ;;  %5975 = vmatprep.mubr.bf16.mxu1 %v1143_v59  ;;  %v8737_v19 = vld [vmem:[#allocation2 + $0x2e0] sm:$0xff]   ;;  %v8751_v54 = vld [vmem:[#allocation2 + $0x2b8] sm:$0xff]  }
  0x61   :  { %v8753_v59 = vld [vmem:[#allocation2 + $0x3c0] sm:$0xff]  }
  0x62   :  { %7906 = vmatpush3.bf16.msra.mxu0 %v8698_v20  ;;  %v8738_v20 = vld [vmem:[#allocation2 + $0x220] sm:$0xff]  }
  0x63   :  { %7907 = vmatprep.subr.bf16.mxu0 %v8700_v24  ;;  %7928 = vmatpush3.bf16.msra.mxu1 %v8699_v21  ;;  %v8739_v21 = vld [vmem:[#allocation2 + $0x2a0] sm:$0xff]   ;;  %v127_v24 = vrot.slane %v9441_v22, %v9401_v31 }
  0x64   :  { %7929 = vmatprep.subr.bf16.mxu1 %v8701_v25  ;;  %v131_v25 = vrot.slane %v9441_v22, %v9403_v33 }
  0x66   :  { %7908 = vmatpush3.bf16.msra.mxu0 %v8702_v26  ;;  %v135_v26 = vrot.slane %v9441_v22, %v9405_v35 }
  0x67   :  { %7909 = vmatprep.subr.bf16.mxu0 %v8704_v29  ;;  %7930 = vmatpush3.bf16.msra.mxu1 %v8703_v27  ;;  %v139_v27 = vrot.slane %v9441_v22, %v9407_v38  ;;  %v8742_v29 = vld [vmem:[#allocation2 + $0x228] sm:$0xff]  }
  0x68   :  { %7931 = vmatprep.subr.bf16.mxu1 %v8705_v30  ;;  %v414_v30 = vcombine.low %v127_v24, %v131_v25  ;;  %v8767_v24 = vld [vmem:[#allocation2 + $0x398] sm:$0xff]  }
  0x6a   :  { %7910 = vmatpush3.bf16.msra.mxu0 %v8706_v32  ;;  %v415_v32 = vcombine.low %v135_v26, %v139_v27  ;;  %v422_v37 = vrot.slane %v414_v30, %v9409_v42  ;;  %v8768_v26 = vld [vmem:[#allocation2 + $0x360] sm:$0xff]  }
  0x6b   :  { %7911 = vmatprep.subr.bf16.mxu0 %v8708_v39  ;;  %7932 = vmatpush3.bf16.msra.mxu1 %v8707_v36  ;;  %v8744_v36 = vld [vmem:[#allocation2 + $0x270] sm:$0xff]   ;;  %v8769_v27 = vld [vmem:[#allocation2 + $0x3e0] sm:$0xff]  }
  0x6c   :  { %7933 = vmatprep.subr.bf16.mxu1 %v8709_v40  ;;  %v429_v39 = vrot.slane %v415_v32, %v9409_v42  ;;  %v58_v40 = vld [vmem:[%s9739_s0 + $0x10] sm:$0xff]  ;;  %v8771_v30 = vld [vmem:[#allocation2 + $0x3a0] sm:$0xff]  }
  0x6e   :  { %7912 = vmatpush3.bf16.msra.mxu0 %v8710_v43  ;;  %v430_v43 = vcombine.low %v422_v37, %v429_v39  ;;  %v8774_v39 = vld [vmem:[#allocation2 + $0x328] sm:$0xff]  }
  0x6f   :  { %7913 = vmatprep.subr.bf16.mxu0 %v8712_v47  ;;  %7934 = vmatpush3.bf16.msra.mxu1 %v8711_v44  ;;  %v8746_v44 = vld [vmem:[#allocation2 + $0x230] sm:$0xff]  }
  0x70   :  { %7935 = vmatprep.subr.bf16.mxu1 %v8713_v48  ;;  %v706_v46 = vadd.f32 %v430_v43, %v58_v40  ;;  %v8747_v47 = vld [vmem:[#allocation2 + $0x2b0] sm:$0xff]   ;;  %v8749_v48 = vld [vmem:[#allocation2 + $0x2f8] sm:$0xff]   ;;  %v8775_v40 = vld [vmem:[#allocation2 + $0x3a8] sm:$0xff]  }
  0x72   :  { %7914 = vmatpush3.bf16.msra.mxu0 %v8714_v51  ;;  %v724_v49 = vmax.f32 %v706_v46, 0.0 }
  0x73   :  { %7915 = vmatprep.subr.bf16.mxu0 %v8716_v55  ;;  %7936 = vmatpush3.bf16.msra.mxu1 %v8715_v52 }
  0x74   :  { %7937 = vmatprep.subr.bf16.mxu1 %v8717_v56  ;;  %v799_v51 = vrot.slane %v724_v49, %v9409_v42  ;;  %v792_v52 = vcombine.high %v724_v49, %v724_v49  ;;  %v8779_v49 = vld [vmem:[#allocation2 + $0x3b0] sm:$0xff]  }
  0x76   :  { %7916 = vmatpush3.bf16.msra.mxu0 %v8718_v60  ;;  %v807_v55 = vcombine.high %v799_v51, %v799_v51  ;;  %v806_v56 = vrot.slane %v792_v52, %v9409_v42  ;;  %v1144_v60 = vpack.c.bf16 %v799_v51, %v799_v51  ;;  %v8780_v52 = vld [vmem:[#allocation2 + $0x378] sm:$0xff]  }
  0x77   :  { %7945 = vmatprep.subr.bf16.mxu0 %v8720_v0  ;;  %7938 = vmatpush3.bf16.msra.mxu1 %v8719_v63  ;;  %v8754_v63 = vld [vmem:[#allocation2 + $0x300] sm:$0xff]   ;;  %v143_v0 = vrot.slane %v9441_v22, %v9420_v57 }
  0x78   :  { %7967 = vmatprep.subr.bf16.mxu1 %v8721_v1  ;;  %v147_v1 = vrot.slane %v9441_v22, %v9422_v58 }
  0x79   :  { %5936 = vmatmul.mubr.bf16.vlgmr.msra.gmra.mrb[4].mxu0 %v1140_v2  ;;  %v1145_v2 = vpack.c.bf16 %v807_v55, %v807_v55  ;;  %v8782_v55 = vld [vmem:[#allocation2 + $0x338] sm:$0xff]  }
  0x7a   :  { %7946 = vmatpush3.bf16.msra.mxu0 %v8722_v3  ;;  %5976 = vmatmul.mubr.bf16.vlgmr.msra.gmra.mrb[4].mxu1 %v1142_v5  ;;  %v808_v3 = vcombine.high %v806_v56, %v806_v56  ;;  %v151_v5 = vrot.slane %v9441_v22, %v9425_v61 }
  0x7b   :  { %7947 = vmatprep.subr.bf16.mxu0 %v8724_v6  ;;  %7968 = vmatpush3.bf16.msra.mxu1 %v8723_v4  ;;  %v8755_v4 = vld [vmem:[#allocation2 + $0x380] sm:$0xff]   ;;  %v155_v6 = vrot.slane %v9441_v22, %v9427_v62  ;;  %v8765_v22 = vld [vmem:[#allocation2 + $0x3d8] sm:$0xff]  }
  0x7c   :  { %7969 = vmatprep.subr.bf16.mxu1 %v8725_v7  ;;  %v1146_v7 = vpack.c.bf16 %v806_v56, %v806_v56  ;;  %6015 = vmatprep.mubr.bf16.mxu0 %v1145_v2  ;;  %v8783_v56 = vld [vmem:[#allocation2 + $0x3b8] sm:$0xff]  }
  0x7e   :  { %7948 = vmatpush3.bf16.msra.mxu0 %v8726_v8  ;;  %v8756_v8 = vld [vmem:[#allocation2 + $0x348] sm:$0xff]  }
  0x7f   :  { %7949 = vmatprep.subr.bf16.mxu0 %v8728_v10  ;;  %7970 = vmatpush3.bf16.msra.mxu1 %v8727_v9  ;;  %v1147_v9 = vpack.c.bf16 %v808_v3, %v808_v3  ;;  %v8757_v10 = vld [vmem:[#allocation2 + $0x3c8] sm:$0xff]  }
  0x80   :  { %7971 = vmatprep.subr.bf16.mxu1 %v8729_v11  ;;  %v8758_v11 = vld [vmem:[#allocation2 + $0x308] sm:$0xff]  }
  0x81   :  { %6055 = vmatprep.mubr.bf16.mxu1 %v1147_v9  ;;  %v8788_v3 = vld [vmem:[#allocation2 + $0x448] sm:$0xff]   ;;  %v8794_v9 = vld [vmem:[#allocation2 + $0x410] sm:$0xff]  }
  0x82   :  { %7950 = vmatpush3.bf16.msra.mxu0 %v8730_v12  ;;  %v8759_v12 = vld [vmem:[#allocation2 + $0x388] sm:$0xff]  }
  0x83   :  { %7951 = vmatprep.subr.bf16.mxu0 %v8732_v14  ;;  %7972 = vmatpush3.bf16.msra.mxu1 %v8731_v13  ;;  %v431_v13 = vcombine.low %v143_v0, %v147_v1  ;;  %v432_v14 = vcombine.low %v151_v5, %v155_v6  ;;  %v8786_v0 = vld [vmem:[#allocation2 + $0x400] sm:$0xff]   ;;  %v8790_v5 = vld [vmem:[#allocation2 + $0x408] sm:$0xff]  }
  0x84   :  { %7973 = vmatprep.subr.bf16.mxu1 %v8733_v15  ;;  %v8760_v15 = vld [vmem:[#allocation2 + $0x350] sm:$0xff]   ;;  %v8787_v1 = vld [vmem:[#allocation2 + $0x480] sm:$0xff]   ;;  %v8791_v6 = vld [vmem:[#allocation2 + $0x488] sm:$0xff]  }
  0x86   :  { %7952 = vmatpush3.bf16.msra.mxu0 %v8734_v16  ;;  %v8761_v16 = vld [vmem:[#allocation2 + $0x3d0] sm:$0xff]  }
  0x87   :  { %7953 = vmatprep.subr.bf16.mxu0 %v8736_v18  ;;  %7974 = vmatpush3.bf16.msra.mxu1 %v8735_v17  ;;  %v8762_v17 = vld [vmem:[#allocation2 + $0x310] sm:$0xff]  }
  0x88   :  { %7975 = vmatprep.subr.bf16.mxu1 %v8737_v19  ;;  %v8763_v18 = vld [vmem:[#allocation2 + $0x390] sm:$0xff]   ;;  %v439_v19 = vrot.slane %v431_v13, %v9409_v42  ;;  %v8798_v13 = vld [vmem:[#allocation2 + $0x418] sm:$0xff]  }
  0x8a   :  { %7954 = vmatpush3.bf16.msra.mxu0 %v8738_v20  ;;  %v446_v20 = vrot.slane %v432_v14, %v9409_v42  ;;  %v8799_v14 = vld [vmem:[#allocation2 + $0x498] sm:$0xff]  }
  0x8b   :  { %7955 = vmatprep.subr.bf16.mxu0 %v8740_v23  ;;  %7976 = vmatpush3.bf16.msra.mxu1 %v8739_v21  ;;  %v8764_v21 = vld [vmem:[#allocation2 + $0x358] sm:$0xff]  }
  0x8c   :  { %7977 = vmatprep.subr.bf16.mxu1 %v8741_v28  ;;  %v8766_v23 = vld [vmem:[#allocation2 + $0x318] sm:$0xff]   ;;  %v447_v25 = vcombine.low %v439_v19, %v446_v20  ;;  %v8770_v28 = vld [vmem:[#allocation2 + $0x320] sm:$0xff]   ;;  %v9473_v19 = vld [vmem:[#allocation5 + $0x10] sm:$0xff] }
  0x8d   :  { %v8804_v20 = vld [vmem:[#allocation2 + $0x468] sm:$0xff]  }
  0x8e   :  { %7956 = vmatpush3.bf16.msra.mxu0 %v8742_v29  ;;  %v59_v29 = vld [vmem:[%s9739_s0 + $0x18] sm:$0xff] }
  0x8f   :  { %7957 = vmatprep.subr.bf16.mxu0 %v8744_v36  ;;  %7978 = vmatpush3.bf16.msra.mxu1 %v8743_v34  ;;  %v707_v32 = vadd.f32 %v447_v25, %v59_v29  ;;  %v8772_v34 = vld [vmem:[#allocation2 + $0x368] sm:$0xff]  }
  0x90   :  { %7979 = vmatprep.subr.bf16.mxu1 %v8745_v41  ;;  %v8773_v36 = vld [vmem:[#allocation2 + $0x3e8] sm:$0xff]  }
  0x91   :  { %v725_v37 = vmax.f32 %v707_v32, 0.0  ;;  %v8805_v25 = vld [vmem:[#allocation2 + $0x4e8] sm:$0xff]  }
  0x92   :  { %7958 = vmatpush3.bf16.msra.mxu0 %v8746_v44  ;;  %v8776_v44 = vld [vmem:[#allocation2 + $0x370] sm:$0xff]   ;;  %v8807_v29 = vld [vmem:[#allocation2 + $0x4a8] sm:$0xff]  }
  0x93   :  { %7959 = vmatprep.subr.bf16.mxu0 %v8748_v45  ;;  %7980 = vmatpush3.bf16.msra.mxu1 %v8747_v47  ;;  %v816_v41 = vrot.slane %v725_v37, %v9409_v42  ;;  %v809_v43 = vcombine.high %v725_v37, %v725_v37  ;;  %v8777_v45 = vld [vmem:[#allocation2 + $0x3f0] sm:$0xff]  }
  0x94   :  { %7981 = vmatprep.subr.bf16.mxu1 %v8749_v48  ;;  %v8778_v48 = vld [vmem:[#allocation2 + $0x330] sm:$0xff]  }
  0x95   :  { %v824_v46 = vcombine.high %v816_v41, %v816_v41  ;;  %v823_v47 = vrot.slane %v809_v43, %v9409_v42  ;;  %v8809_v37 = vld [vmem:[#allocation2 + $0x4f0] sm:$0xff]  }
  0x96   :  { %7960 = vmatpush3.bf16.msra.mxu0 %v8750_v50 }
  0x97   :  { %7989 = vmatprep.subr.bf16.mxu0 %v8752_v53  ;;  %7982 = vmatpush3.bf16.msra.mxu1 %v8751_v54  ;;  %v1149_v50 = vpack.c.bf16 %v824_v46, %v824_v46  ;;  %v825_v51 = vcombine.high %v823_v47, %v823_v47  ;;  %v8781_v53 = vld [vmem:[#allocation2 + $0x3f8] sm:$0xff]   ;;  %v1150_v2 = vpack.c.bf16 %v823_v47, %v823_v47 }
  0x98   :  { %8011 = vmatprep.subr.bf16.mxu1 %v8753_v59  ;;  %v8784_v59 = vld [vmem:[#allocation2 + $0x440] sm:$0xff]   ;;  %v8814_v47 = vld [vmem:[#allocation2 + $0x438] sm:$0xff]  }
  0x99   :  { %6016 = vmatmul.mubr.bf16.vlgmr.msra.gmra.mrb[8].mxu0 %v1144_v60  ;;  %v1151_v54 = vpack.c.bf16 %v825_v51, %v825_v51  ;;  %v8785_v60 = vld [vmem:[#allocation2 + $0x4c0] sm:$0xff]   ;;  %v8815_v51 = vld [vmem:[#allocation2 + $0x4b8] sm:$0xff]  }
  0x9a   :  { %7990 = vmatpush3.bf16.msra.mxu0 %v8754_v63  ;;  %6056 = vmatmul.mubr.bf16.vlgmr.msra.gmra.mrb[8].mxu1 %v1146_v7  ;;  %v1148_v63 = vpack.c.bf16 %v816_v41, %v816_v41  ;;  %v8792_v7 = vld [vmem:[#allocation2 + $0x450] sm:$0xff]   ;;  %v8812_v41 = vld [vmem:[#allocation2 + $0x478] sm:$0xff]  }
  0x9b   :  { %7991 = vmatprep.subr.bf16.mxu0 %v8756_v8  ;;  %8012 = vmatpush3.bf16.msra.mxu1 %v8755_v4  ;;  %v8789_v4 = vld [vmem:[#allocation2 + $0x4c8] sm:$0xff]   ;;  %v8793_v8 = vld [vmem:[#allocation2 + $0x4d0] sm:$0xff]  }
  0x9c   :  { %8013 = vmatprep.subr.bf16.mxu1 %v8757_v10  ;;  %6095 = vmatprep.mubr.bf16.mxu0 %v1149_v50  ;;  %v8795_v10 = vld [vmem:[#allocation2 + $0x490] sm:$0xff]   ;;  %v8816_v50 = vld [vmem:[#allocation2 + $0x540] sm:$0xff]  }
  0x9d   :  { %6135 = vmatprep.mubr.bf16.mxu1 %v1151_v54  ;;  %v8817_v54 = vld [vmem:[#allocation2 + $0x5c0] sm:$0xff]  }
  0x9e   :  { %7992 = vmatpush3.bf16.msra.mxu0 %v8758_v11  ;;  %v8796_v11 = vld [vmem:[#allocation2 + $0x458] sm:$0xff]  }
  0x9f   :  { %7993 = vmatprep.subr.bf16.mxu0 %v8760_v15  ;;  %8014 = vmatpush3.bf16.msra.mxu1 %v8759_v12  ;;  %v8797_v12 = vld [vmem:[#allocation2 + $0x4d8] sm:$0xff]   ;;  %v8800_v15 = vld [vmem:[#allocation2 + $0x460] sm:$0xff]  }
  0xa0   :  { %8015 = vmatprep.subr.bf16.mxu1 %v8761_v16  ;;  %v8801_v16 = vld [vmem:[#allocation2 + $0x4e0] sm:$0xff]  }
  0xa2   :  { %7994 = vmatpush3.bf16.msra.mxu0 %v8762_v17  ;;  %v8802_v17 = vld [vmem:[#allocation2 + $0x420] sm:$0xff]  }
  0xa3   :  { %7995 = vmatprep.subr.bf16.mxu0 %v8764_v21  ;;  %8016 = vmatpush3.bf16.msra.mxu1 %v8763_v18  ;;  %v8803_v18 = vld [vmem:[#allocation2 + $0x4a0] sm:$0xff]   ;;  %v159_v21 = vrot.slane %v9473_v19, %v9401_v31 }
  0xa4   :  { %8017 = vmatprep.subr.bf16.mxu1 %v8765_v22  ;;  %v163_v22 = vrot.slane %v9473_v19, %v9403_v33 }
  0xa6   :  { %7996 = vmatpush3.bf16.msra.mxu0 %v8766_v23  ;;  %v167_v23 = vrot.slane %v9473_v19, %v9405_v35 }
  0xa7   :  { %7997 = vmatprep.subr.bf16.mxu0 %v8768_v26  ;;  %8018 = vmatpush3.bf16.msra.mxu1 %v8767_v24  ;;  %v171_v24 = vrot.slane %v9473_v19, %v9407_v38  ;;  %v8806_v26 = vld [vmem:[#allocation2 + $0x428] sm:$0xff]  }
  0xa8   :  { %8019 = vmatprep.subr.bf16.mxu1 %v8769_v27  ;;  %v448_v27 = vcombine.low %v159_v21, %v163_v22  ;;  %v8831_v21 = vld [vmem:[#allocation2 + $0x598] sm:$0xff]  }
  0xaa   :  { %7998 = vmatpush3.bf16.msra.mxu0 %v8770_v28  ;;  %v449_v28 = vcombine.low %v167_v23, %v171_v24  ;;  %v456_v32 = vrot.slane %v448_v27, %v9409_v42  ;;  %v8832_v23 = vld [vmem:[#allocation2 + $0x560] sm:$0xff]  }
  0xab   :  { %7999 = vmatprep.subr.bf16.mxu0 %v8772_v34  ;;  %8020 = vmatpush3.bf16.msra.mxu1 %v8771_v30  ;;  %v8808_v30 = vld [vmem:[#allocation2 + $0x470] sm:$0xff]   ;;  %v8833_v24 = vld [vmem:[#allocation2 + $0x5e0] sm:$0xff]  }
  0xac   :  { %8021 = vmatprep.subr.bf16.mxu1 %v8773_v36  ;;  %v463_v34 = vrot.slane %v449_v28, %v9409_v42  ;;  %v60_v36 = vld [vmem:[%s9739_s0 + $0x20] sm:$0xff] }
  0xad   :  { %v8835_v27 = vld [vmem:[#allocation2 + $0x5a0] sm:$0xff]  }
  0xae   :  { %8000 = vmatpush3.bf16.msra.mxu0 %v8774_v39  ;;  %v464_v39 = vcombine.low %v456_v32, %v463_v34  ;;  %v8838_v34 = vld [vmem:[#allocation2 + $0x528] sm:$0xff]  }
  0xaf   :  { %8001 = vmatprep.subr.bf16.mxu0 %v8776_v44  ;;  %8022 = vmatpush3.bf16.msra.mxu1 %v8775_v40  ;;  %v8810_v40 = vld [vmem:[#allocation2 + $0x430] sm:$0xff]  }
  0xb0   :  { %8023 = vmatprep.subr.bf16.mxu1 %v8777_v45  ;;  %v708_v43 = vadd.f32 %v464_v39, %v60_v36  ;;  %v8811_v44 = vld [vmem:[#allocation2 + $0x4b0] sm:$0xff]   ;;  %v8813_v45 = vld [vmem:[#allocation2 + $0x4f8] sm:$0xff]   ;;  %v8839_v36 = vld [vmem:[#allocation2 + $0x5a8] sm:$0xff]  }
  0xb2   :  { %8002 = vmatpush3.bf16.msra.mxu0 %v8778_v48  ;;  %v726_v46 = vmax.f32 %v708_v43, 0.0 }
  0xb3   :  { %8003 = vmatprep.subr.bf16.mxu0 %v8780_v52  ;;  %8024 = vmatpush3.bf16.msra.mxu1 %v8779_v49 }
  0xb4   :  { %8025 = vmatprep.subr.bf16.mxu1 %v8781_v53  ;;  %v833_v48 = vrot.slane %v726_v46, %v9409_v42  ;;  %v826_v49 = vcombine.high %v726_v46, %v726_v46  ;;  %v8843_v46 = vld [vmem:[#allocation2 + $0x5b0] sm:$0xff]  }
  0xb6   :  { %8004 = vmatpush3.bf16.msra.mxu0 %v8782_v55  ;;  %v841_v52 = vcombine.high %v833_v48, %v833_v48  ;;  %v840_v53 = vrot.slane %v826_v49, %v9409_v42  ;;  %v1152_v55 = vpack.c.bf16 %v833_v48, %v833_v48  ;;  %v8844_v49 = vld [vmem:[#allocation2 + $0x578] sm:$0xff]  }
  0xb7   :  { %8033 = vmatprep.subr.bf16.mxu0 %v8784_v59  ;;  %8026 = vmatpush3.bf16.msra.mxu1 %v8783_v56  ;;  %v8818_v56 = vld [vmem:[#allocation2 + $0x500] sm:$0xff]   ;;  %v175_v59 = vrot.slane %v9473_v19, %v9420_v57 }
  0xb8   :  { %8055 = vmatprep.subr.bf16.mxu1 %v8785_v60  ;;  %v179_v60 = vrot.slane %v9473_v19, %v9422_v58 }
  0xb9   :  { %6096 = vmatmul.mubr.bf16.vlgmr.msra.gmra.mrb[12].mxu0 %v1148_v63  ;;  %v1153_v63 = vpack.c.bf16 %v841_v52, %v841_v52  ;;  %v8846_v52 = vld [vmem:[#allocation2 + $0x538] sm:$0xff]  }
  0xba   :  { %8034 = vmatpush3.bf16.msra.mxu0 %v8786_v0  ;;  %6136 = vmatmul.mubr.bf16.vlgmr.msra.gmra.mrb[12].mxu1 %v1150_v2  ;;  %v842_v0 = vcombine.high %v840_v53, %v840_v53  ;;  %v183_v2 = vrot.slane %v9473_v19, %v9425_v61 }
  0xbb   :  { %8035 = vmatprep.subr.bf16.mxu0 %v8788_v3  ;;  %8056 = vmatpush3.bf16.msra.mxu1 %v8787_v1  ;;  %v8819_v1 = vld [vmem:[#allocation2 + $0x580] sm:$0xff]   ;;  %v187_v3 = vrot.slane %v9473_v19, %v9427_v62  ;;  %v8829_v19 = vld [vmem:[#allocation2 + $0x5d8] sm:$0xff]  }
  0xbc   :  { %8057 = vmatprep.subr.bf16.mxu1 %v8789_v4  ;;  %v1154_v4 = vpack.c.bf16 %v840_v53, %v840_v53  ;;  %6175 = vmatprep.mubr.bf16.mxu0 %v1153_v63  ;;  %v8847_v53 = vld [vmem:[#allocation2 + $0x5b8] sm:$0xff]  }
  0xbe   :  { %8036 = vmatpush3.bf16.msra.mxu0 %v8790_v5  ;;  %v8820_v5 = vld [vmem:[#allocation2 + $0x548] sm:$0xff]  }
  0xbf   :  { %8037 = vmatprep.subr.bf16.mxu0 %v8792_v7  ;;  %8058 = vmatpush3.bf16.msra.mxu1 %v8791_v6  ;;  %v1155_v6 = vpack.c.bf16 %v842_v0, %v842_v0  ;;  %v8821_v7 = vld [vmem:[#allocation2 + $0x5c8] sm:$0xff]  }
  0xc0   :  { %8059 = vmatprep.subr.bf16.mxu1 %v8793_v8  ;;  %v8822_v8 = vld [vmem:[#allocation2 + $0x508] sm:$0xff]  }
  0xc1   :  { %6215 = vmatprep.mubr.bf16.mxu1 %v1155_v6  ;;  %v8852_v0 = vld [vmem:[#allocation2 + $0x648] sm:$0xff]   ;;  %v8858_v6 = vld [vmem:[#allocation2 + $0x610] sm:$0xff]  }
  0xc2   :  { %8038 = vmatpush3.bf16.msra.mxu0 %v8794_v9  ;;  %v8823_v9 = vld [vmem:[#allocation2 + $0x588] sm:$0xff]  }
  0xc3   :  { %8039 = vmatprep.subr.bf16.mxu0 %v8796_v11  ;;  %8060 = vmatpush3.bf16.msra.mxu1 %v8795_v10  ;;  %v465_v10 = vcombine.low %v175_v59, %v179_v60  ;;  %v466_v11 = vcombine.low %v183_v2, %v187_v3  ;;  %v8850_v59 = vld [vmem:[#allocation2 + $0x600] sm:$0xff]   ;;  %v8854_v2 = vld [vmem:[#allocation2 + $0x608] sm:$0xff]  }
  0xc4   :  { %8061 = vmatprep.subr.bf16.mxu1 %v8797_v12  ;;  %v8824_v12 = vld [vmem:[#allocation2 + $0x550] sm:$0xff]   ;;  %v8851_v60 = vld [vmem:[#allocation2 + $0x680] sm:$0xff]   ;;  %v8855_v3 = vld [vmem:[#allocation2 + $0x688] sm:$0xff]  }
  0xc6   :  { %8040 = vmatpush3.bf16.msra.mxu0 %v8798_v13  ;;  %v8825_v13 = vld [vmem:[#allocation2 + $0x5d0] sm:$0xff]  }
  0xc7   :  { %8041 = vmatprep.subr.bf16.mxu0 %v8800_v15  ;;  %8062 = vmatpush3.bf16.msra.mxu1 %v8799_v14  ;;  %v8826_v14 = vld [vmem:[#allocation2 + $0x510] sm:$0xff]  }
  0xc8   :  { %8063 = vmatprep.subr.bf16.mxu1 %v8801_v16  ;;  %v8827_v15 = vld [vmem:[#allocation2 + $0x590] sm:$0xff]   ;;  %v473_v16 = vrot.slane %v465_v10, %v9409_v42  ;;  %v8862_v10 = vld [vmem:[#allocation2 + $0x618] sm:$0xff]  }
  0xca   :  { %8042 = vmatpush3.bf16.msra.mxu0 %v8802_v17  ;;  %v480_v17 = vrot.slane %v466_v11, %v9409_v42  ;;  %v8863_v11 = vld [vmem:[#allocation2 + $0x698] sm:$0xff]  }
  0xcb   :  { %8043 = vmatprep.subr.bf16.mxu0 %v8804_v20  ;;  %8064 = vmatpush3.bf16.msra.mxu1 %v8803_v18  ;;  %v8828_v18 = vld [vmem:[#allocation2 + $0x558] sm:$0xff]  }
  0xcc   :  { %8065 = vmatprep.subr.bf16.mxu1 %v8805_v25  ;;  %v8830_v20 = vld [vmem:[#allocation2 + $0x518] sm:$0xff]   ;;  %v481_v22 = vcombine.low %v473_v16, %v480_v17  ;;  %v8834_v25 = vld [vmem:[#allocation2 + $0x520] sm:$0xff]   ;;  %v8868_v17 = vld [vmem:[#allocation2 + $0x668] sm:$0xff]  }
  0xcd   :  { %v9505_v16 = vld [vmem:[#allocation5 + $0x18] sm:$0xff] }
  0xce   :  { %8044 = vmatpush3.bf16.msra.mxu0 %v8806_v26  ;;  %v61_v26 = vld [vmem:[%s9739_s0 + $0x28] sm:$0xff] }
  0xcf   :  { %8045 = vmatprep.subr.bf16.mxu0 %v8808_v30  ;;  %8066 = vmatpush3.bf16.msra.mxu1 %v8807_v29  ;;  %v709_v28 = vadd.f32 %v481_v22, %v61_v26  ;;  %v8836_v29 = vld [vmem:[#allocation2 + $0x568] sm:$0xff]  }
  0xd0   :  { %8067 = vmatprep.subr.bf16.mxu1 %v8809_v37  ;;  %v8837_v30 = vld [vmem:[#allocation2 + $0x5e8] sm:$0xff]  }
  0xd1   :  { %v727_v32 = vmax.f32 %v709_v28, 0.0  ;;  %v8869_v22 = vld [vmem:[#allocation2 + $0x6e8] sm:$0xff]  }
  0xd2   :  { %8046 = vmatpush3.bf16.msra.mxu0 %v8810_v40  ;;  %v8840_v40 = vld [vmem:[#allocation2 + $0x570] sm:$0xff]   ;;  %v8871_v26 = vld [vmem:[#allocation2 + $0x6a8] sm:$0xff]  }
  0xd3   :  { %8047 = vmatprep.subr.bf16.mxu0 %v8812_v41  ;;  %8068 = vmatpush3.bf16.msra.mxu1 %v8811_v44  ;;  %v850_v37 = vrot.slane %v727_v32, %v9409_v42  ;;  %v843_v39 = vcombine.high %v727_v32, %v727_v32  ;;  %v8841_v41 = vld [vmem:[#allocation2 + $0x5f0] sm:$0xff]  }
  0xd4   :  { %8069 = vmatprep.subr.bf16.mxu1 %v8813_v45  ;;  %v8842_v45 = vld [vmem:[#allocation2 + $0x530] sm:$0xff]  }
  0xd5   :  { %v858_v43 = vcombine.high %v850_v37, %v850_v37  ;;  %v857_v44 = vrot.slane %v843_v39, %v9409_v42  ;;  %v8873_v32 = vld [vmem:[#allocation2 + $0x6f0] sm:$0xff]  }
  0xd6   :  { %8048 = vmatpush3.bf16.msra.mxu0 %v8814_v47 }
  0xd7   :  { %8077 = vmatprep.subr.bf16.mxu0 %v8816_v50  ;;  %8070 = vmatpush3.bf16.msra.mxu1 %v8815_v51  ;;  %v1157_v47 = vpack.c.bf16 %v858_v43, %v858_v43  ;;  %v859_v48 = vcombine.high %v857_v44, %v857_v44  ;;  %v8845_v50 = vld [vmem:[#allocation2 + $0x5f8] sm:$0xff]   ;;  %v1158_v63 = vpack.c.bf16 %v857_v44, %v857_v44 }
  0xd8   :  { %8099 = vmatprep.subr.bf16.mxu1 %v8817_v54  ;;  %v8848_v54 = vld [vmem:[#allocation2 + $0x640] sm:$0xff]   ;;  %v8878_v44 = vld [vmem:[#allocation2 + $0x638] sm:$0xff]  }
  0xd9   :  { %6176 = vmatmul.mubr.bf16.vlgmr.msra.gmra.mrb[16].mxu0 %v1152_v55  ;;  %v1159_v51 = vpack.c.bf16 %v859_v48, %v859_v48  ;;  %v8849_v55 = vld [vmem:[#allocation2 + $0x6c0] sm:$0xff]   ;;  %v8879_v48 = vld [vmem:[#allocation2 + $0x6b8] sm:$0xff]  }
  0xda   :  { %8078 = vmatpush3.bf16.msra.mxu0 %v8818_v56  ;;  %6216 = vmatmul.mubr.bf16.vlgmr.msra.gmra.mrb[16].mxu1 %v1154_v4  ;;  %v1156_v56 = vpack.c.bf16 %v850_v37, %v850_v37  ;;  %v8856_v4 = vld [vmem:[#allocation2 + $0x650] sm:$0xff]   ;;  %v8876_v37 = vld [vmem:[#allocation2 + $0x678] sm:$0xff]  }
  0xdb   :  { %8079 = vmatprep.subr.bf16.mxu0 %v8820_v5  ;;  %8100 = vmatpush3.bf16.msra.mxu1 %v8819_v1  ;;  %v8853_v1 = vld [vmem:[#allocation2 + $0x6c8] sm:$0xff]   ;;  %v8857_v5 = vld [vmem:[#allocation2 + $0x6d0] sm:$0xff]  }
  0xdc   :  { %8101 = vmatprep.subr.bf16.mxu1 %v8821_v7  ;;  %6255 = vmatprep.mubr.bf16.mxu0 %v1157_v47  ;;  %v8859_v7 = vld [vmem:[#allocation2 + $0x690] sm:$0xff]   ;;  %v8880_v47 = vld [vmem:[#allocation2 + $0x740] sm:$0xff]  }
  0xdd   :  { %6295 = vmatprep.mubr.bf16.mxu1 %v1159_v51  ;;  %v8881_v51 = vld [vmem:[#allocation2 + $0x7c0] sm:$0xff]  }
  0xde   :  { %8080 = vmatpush3.bf16.msra.mxu0 %v8822_v8  ;;  %v8860_v8 = vld [vmem:[#allocation2 + $0x658] sm:$0xff]  }
  0xdf   :  { %8081 = vmatprep.subr.bf16.mxu0 %v8824_v12  ;;  %8102 = vmatpush3.bf16.msra.mxu1 %v8823_v9  ;;  %v8861_v9 = vld [vmem:[#allocation2 + $0x6d8] sm:$0xff]   ;;  %v8864_v12 = vld [vmem:[#allocation2 + $0x660] sm:$0xff]  }
  0xe0   :  { %8103 = vmatprep.subr.bf16.mxu1 %v8825_v13  ;;  %v8865_v13 = vld [vmem:[#allocation2 + $0x6e0] sm:$0xff]  }
  0xe2   :  { %8082 = vmatpush3.bf16.msra.mxu0 %v8826_v14  ;;  %v8866_v14 = vld [vmem:[#allocation2 + $0x620] sm:$0xff]  }
  0xe3   :  { %8083 = vmatprep.subr.bf16.mxu0 %v8828_v18  ;;  %8104 = vmatpush3.bf16.msra.mxu1 %v8827_v15  ;;  %v8867_v15 = vld [vmem:[#allocation2 + $0x6a0] sm:$0xff]   ;;  %v191_v18 = vrot.slane %v9505_v16, %v9401_v31 }
  0xe4   :  { %8105 = vmatprep.subr.bf16.mxu1 %v8829_v19  ;;  %v195_v19 = vrot.slane %v9505_v16, %v9403_v33 }
  0xe6   :  { %8084 = vmatpush3.bf16.msra.mxu0 %v8830_v20  ;;  %v199_v20 = vrot.slane %v9505_v16, %v9405_v35 }
  0xe7   :  { %8085 = vmatprep.subr.bf16.mxu0 %v8832_v23  ;;  %8106 = vmatpush3.bf16.msra.mxu1 %v8831_v21  ;;  %v203_v21 = vrot.slane %v9505_v16, %v9407_v38  ;;  %v8870_v23 = vld [vmem:[#allocation2 + $0x628] sm:$0xff]  }
  0xe8   :  { %8107 = vmatprep.subr.bf16.mxu1 %v8833_v24  ;;  %v482_v24 = vcombine.low %v191_v18, %v195_v19  ;;  %v8895_v18 = vld [vmem:[#allocation2 + $0x798] sm:$0xff]   ;;  %v8896_v19 = vld [vmem:[#allocation2 + $0x760] sm:$0xff]  }
  0xea   :  { %8086 = vmatpush3.bf16.msra.mxu0 %v8834_v25  ;;  %v483_v25 = vcombine.low %v199_v20, %v203_v21  ;;  %v490_v28 = vrot.slane %v482_v24, %v9409_v42  ;;  %v8897_v21 = vld [vmem:[#allocation2 + $0x7e0] sm:$0xff]   ;;  %v63_v24 = vld [vmem:[%s9739_s0 + $0x38] sm:$0xff] }
  0xeb   :  { %8087 = vmatprep.subr.bf16.mxu0 %v8836_v29  ;;  %8108 = vmatpush3.bf16.msra.mxu1 %v8835_v27  ;;  %v8872_v27 = vld [vmem:[#allocation2 + $0x670] sm:$0xff]  }
  0xec   :  { %8109 = vmatprep.subr.bf16.mxu1 %v8837_v30  ;;  %v497_v29 = vrot.slane %v483_v25, %v9409_v42  ;;  %v62_v30 = vld [vmem:[%s9739_s0 + $0x30] sm:$0xff]  ;;  %v8900_v25 = vld [vmem:[#allocation2 + $0x768] sm:$0xff]  }
  0xee   :  { %8088 = vmatpush3.bf16.msra.mxu0 %v8838_v34  ;;  %v498_v34 = vcombine.low %v490_v28, %v497_v29  ;;  %v8901_v29 = vld [vmem:[#allocation2 + $0x7e8] sm:$0xff]  }
  0xef   :  { %8089 = vmatprep.subr.bf16.mxu0 %v8840_v40  ;;  %8110 = vmatpush3.bf16.msra.mxu1 %v8839_v36  ;;  %v8874_v36 = vld [vmem:[#allocation2 + $0x630] sm:$0xff]  }
  0xf0   :  { %8111 = vmatprep.subr.bf16.mxu1 %v8841_v41  ;;  %v710_v39 = vadd.f32 %v498_v34, %v62_v30  ;;  %v8875_v40 = vld [vmem:[#allocation2 + $0x6b0] sm:$0xff]   ;;  %v8877_v41 = vld [vmem:[#allocation2 + $0x6f8] sm:$0xff]   ;;  %v8902_v30 = vld [vmem:[#allocation2 + $0x728] sm:$0xff]  }
  0xf2   :  { %8090 = vmatpush3.bf16.msra.mxu0 %v8842_v45  ;;  %v728_v43 = vmax.f32 %v710_v39, 0.0 }
  0xf3   :  { %8091 = vmatprep.subr.bf16.mxu0 %v8844_v49  ;;  %8112 = vmatpush3.bf16.msra.mxu1 %v8843_v46 }
  0xf4   :  { %8113 = vmatprep.subr.bf16.mxu1 %v8845_v50  ;;  %v867_v45 = vrot.slane %v728_v43, %v9409_v42  ;;  %v860_v46 = vcombine.high %v728_v43, %v728_v43 }
  0xf6   :  { %8092 = vmatpush3.bf16.msra.mxu0 %v8846_v52  ;;  %v875_v49 = vcombine.high %v867_v45, %v867_v45  ;;  %v874_v50 = vrot.slane %v860_v46, %v9409_v42  ;;  %v1160_v52 = vpack.c.bf16 %v867_v45, %v867_v45  ;;  %v8903_v45 = vld [vmem:[#allocation2 + $0x7a8] sm:$0xff]  }
  0xf7   :  { %8121 = vmatprep.subr.bf16.mxu0 %v8848_v54  ;;  %8114 = vmatpush3.bf16.msra.mxu1 %v8847_v53 }
  0xf8   :  { %8143 = vmatprep.subr.bf16.mxu1 %v8849_v55  ;;  %v1161_v53 = vpack.c.bf16 %v875_v49, %v875_v49  ;;  %v876_v54 = vcombine.high %v874_v50, %v874_v50  ;;  %v8882_v55 = vld [vmem:[#allocation2 + $0x700] sm:$0xff]  }
  0xf9   :  { %6256 = vmatmul.mubr.bf16.vlgmr.msra.gmra.mrb[20].mxu0 %v1156_v56  ;;  %v207_v56 = vrot.slane %v9505_v16, %v9420_v57 }
  0xfa   :  { %8122 = vmatpush3.bf16.msra.mxu0 %v8850_v59  ;;  %6296 = vmatmul.mubr.bf16.vlgmr.msra.gmra.mrb[20].mxu1 %v1158_v63  ;;  %v1162_v59 = vpack.c.bf16 %v874_v50, %v874_v50  ;;  %v211_v63 = vrot.slane %v9505_v16, %v9422_v58 }
  0xfb   :  { %8123 = vmatprep.subr.bf16.mxu0 %v8852_v0  ;;  %8144 = vmatpush3.bf16.msra.mxu1 %v8851_v60  ;;  %v8884_v60 = vld [vmem:[#allocation2 + $0x748] sm:$0xff]   ;;  %v215_v0 = vrot.slane %v9505_v16, %v9425_v61 }
  0xfc   :  { %8145 = vmatprep.subr.bf16.mxu1 %v8853_v1  ;;  %v219_v1 = vrot.slane %v9505_v16, %v9427_v62  ;;  %6335 = vmatprep.mubr.bf16.mxu0 %v1161_v53  ;;  %v8893_v16 = vld [vmem:[#allocation2 + $0x7d8] sm:$0xff]  }
  0xfe   :  { %8124 = vmatpush3.bf16.msra.mxu0 %v8854_v2  ;;  %v1163_v2 = vpack.c.bf16 %v876_v54, %v876_v54 }
  0xff   :  { %8125 = vmatprep.subr.bf16.mxu0 %v8856_v4  ;;  %8146 = vmatpush3.bf16.msra.mxu1 %v8855_v3  ;;  %v8883_v3 = vld [vmem:[#allocation2 + $0x780] sm:$0xff]   ;;  %v8885_v4 = vld [vmem:[#allocation2 + $0x7c8] sm:$0xff]  }
 0x100   :  { %8147 = vmatprep.subr.bf16.mxu1 %v8857_v5  ;;  %v8886_v5 = vld [vmem:[#allocation2 + $0x708] sm:$0xff]   ;;  %6375 = vmatprep.mubr.bf16.mxu1 %v1163_v2 }
 0x102   :  { %8126 = vmatpush3.bf16.msra.mxu0 %v8858_v6  ;;  %v8887_v6 = vld [vmem:[#allocation2 + $0x788] sm:$0xff]  }
 0x103   :  { %8127 = vmatprep.subr.bf16.mxu0 %v8860_v8  ;;  %8148 = vmatpush3.bf16.msra.mxu1 %v8859_v7  ;;  %v8888_v7 = vld [vmem:[#allocation2 + $0x750] sm:$0xff]   ;;  %v499_v8 = vcombine.low %v207_v56, %v211_v63  ;;  %v8908_v56 = vld [vmem:[#allocation2 + $0x778] sm:$0xff]  }
 0x104   :  { %8149 = vmatprep.subr.bf16.mxu1 %v8861_v9  ;;  %v500_v9 = vcombine.low %v215_v0, %v219_v1  ;;  %v8909_v0 = vld [vmem:[#allocation2 + $0x7f8] sm:$0xff]  }
 0x105   :  { %v8910_v1 = vld [vmem:[#allocation2 + $0x738] sm:$0xff]  }
 0x106   :  { %8128 = vmatpush3.bf16.msra.mxu0 %v8862_v10  ;;  %v8889_v10 = vld [vmem:[#allocation2 + $0x7d0] sm:$0xff]  }
 0x107   :  { %8129 = vmatprep.subr.bf16.mxu0 %v8864_v12  ;;  %8150 = vmatpush3.bf16.msra.mxu1 %v8863_v11  ;;  %v8890_v11 = vld [vmem:[#allocation2 + $0x710] sm:$0xff]  }
 0x108   :  { %8151 = vmatprep.subr.bf16.mxu1 %v8865_v13  ;;  %v8891_v12 = vld [vmem:[#allocation2 + $0x790] sm:$0xff]   ;;  %v8892_v13 = vld [vmem:[#allocation2 + $0x758] sm:$0xff]  }
 0x10a   :  { %8130 = vmatpush3.bf16.msra.mxu0 %v8866_v14  ;;  %v507_v14 = vrot.slane %v499_v8, %v9409_v42  ;;  %v8915_v8 = vld [vmem:[#allocation2 + $0x880] sm:$0xff]  }
 0x10b   :  { %8131 = vmatprep.subr.bf16.mxu0 %v8868_v17  ;;  %8152 = vmatpush3.bf16.msra.mxu1 %v8867_v15  ;;  %v514_v15 = vrot.slane %v500_v9, %v9409_v42  ;;  %v8894_v17 = vld [vmem:[#allocation2 + $0x718] sm:$0xff]  }
 0x10c   :  { %8153 = vmatprep.subr.bf16.mxu1 %v8869_v22  ;;  %v8898_v22 = vld [vmem:[#allocation2 + $0x720] sm:$0xff]  }
 0x10d   :  { %v515_v20 = vcombine.low %v507_v14, %v514_v15  ;;  %v8920_v14 = vld [vmem:[#allocation2 + $0x850] sm:$0xff]  }
 0x10e   :  { %8132 = vmatpush3.bf16.msra.mxu0 %v8870_v23  ;;  %v8899_v23 = vld [vmem:[#allocation2 + $0x7a0] sm:$0xff]   ;;  %v8921_v15 = vld [vmem:[#allocation2 + $0x8d0] sm:$0xff]  }
 0x10f   :  { %8133 = vmatprep.subr.bf16.mxu0 %v8872_v27  ;;  %8154 = vmatpush3.bf16.msra.mxu1 %v8871_v26  ;;  %v711_v26 = vadd.f32 %v515_v20, %v63_v24  ;;  %v7280_v27 = vld [vmem:[#allocation7] ss:$0 sm:$0xff]  ;;  %v8926_v20 = vld [vmem:[#allocation2 + $0x818] sm:$0xff]   ;;  %v8930_v24 = vld [vmem:[#allocation2 + $0x820] sm:$0xff]  }
 0x110   :  { %8155 = vmatprep.subr.bf16.mxu1 %v8873_v32 }
 0x111   :  { %v729_v32 = vmax.f32 %v711_v26, 0.0  ;;  %v8932_v26 = vld [vmem:[#allocation2 + $0x868] sm:$0xff]  }
 0x112   :  { %8134 = vmatpush3.bf16.msra.mxu0 %v8874_v36  ;;  %v8904_v36 = vld [vmem:[#allocation2 + $0x770] sm:$0xff]  }
 0x113   :  { %8135 = vmatprep.subr.bf16.mxu0 %v8876_v37  ;;  %8156 = vmatpush3.bf16.msra.mxu1 %v8875_v40  ;;  %v877_v43 = vcombine.high %v729_v32, %v729_v32 }
 0x114   :  { %8157 = vmatprep.subr.bf16.mxu1 %v8877_v41  ;;  %v884_v41 = vrot.slane %v729_v32, %v9409_v42 }
 0x115   :  { %v891_v53 = vrot.slane %v877_v43, %v9409_v42 }
 0x116   :  { %8136 = vmatpush3.bf16.msra.mxu0 %v8878_v44 }
 0x117   :  { %8165 = vmatprep.subr.bf16.mxu0 %v8880_v47  ;;  %8158 = vmatpush3.bf16.msra.mxu1 %v8879_v48  ;;  %v8905_v47 = vld [vmem:[#allocation2 + $0x7f0] sm:$0xff]   ;;  %v893_v63 = vcombine.high %v891_v53, %v891_v53  ;;  %v1166_v9 = vpack.c.bf16 %v891_v53, %v891_v53 }
 0x118   :  { %8187 = vmatprep.subr.bf16.mxu1 %v8881_v51  ;;  %v8906_v51 = vld [vmem:[#allocation2 + $0x730] sm:$0xff]  }
 0x119   :  { %6336 = vmatmul.mubr.bf16.vlgmr.msra.gmra.mrb[24].mxu0 %v1160_v52  ;;  %v892_v52 = vcombine.high %v884_v41, %v884_v41  ;;  %v1167_v2 = vpack.c.bf16 %v893_v63, %v893_v63  ;;  %v8938_v63 = vld [vmem:[#allocation2 + $0x830] sm:$0xff]  }
 0x11a   :  { %8166 = vmatpush3.bf16.msra.mxu0 %v8882_v55  ;;  %6376 = vmatmul.mubr.bf16.vlgmr.msra.gmra.mrb[24].mxu1 %v1162_v59  ;;  %v8907_v55 = vld [vmem:[#allocation2 + $0x7b0] sm:$0xff]  }
 0x11b   :  { %8167 = vmatprep.subr.bf16.mxu0 %v8884_v60  ;;  %8188 = vmatpush3.bf16.msra.mxu1 %v8883_v3  ;;  %v1165_v60 = vpack.c.bf16 %v892_v52, %v892_v52  ;;  %v8911_v3 = vld [vmem:[#allocation2 + $0x7b8] sm:$0xff]  }
 0x11c   :  { %8189 = vmatprep.subr.bf16.mxu1 %v8885_v4  ;;  %6455 = vmatprep.mubr.bf16.mxu1 %v1167_v2  ;;  %v8912_v4 = vld [vmem:[#allocation2 + $0x840] sm:$0xff]   ;;  %v8940_v2 = vld [vmem:[#allocation2 + $0x878] sm:$0xff]  }
 0x11d   :  { %6415 = vmatprep.mubr.bf16.mxu0 %v1165_v60 }
 0x11e   :  { %8168 = vmatpush3.bf16.msra.mxu0 %v8886_v5  ;;  %v8913_v5 = vld [vmem:[#allocation2 + $0x8c0] sm:$0xff]  }
 0x11f   :  { %8169 = vmatprep.subr.bf16.mxu0 %v8888_v7  ;;  %8190 = vmatpush3.bf16.msra.mxu1 %v8887_v6  ;;  %v1164_v6 = vpack.c.bf16 %v884_v41, %v884_v41  ;;  %v8914_v7 = vld [vmem:[#allocation2 + $0x800] sm:$0xff]  }
 0x120   :  { %8191 = vmatprep.subr.bf16.mxu1 %v8889_v10  ;;  %v8916_v10 = vld [vmem:[#allocation2 + $0x848] sm:$0xff]  }
 0x122   :  { %8170 = vmatpush3.bf16.msra.mxu0 %v8890_v11  ;;  %v8917_v11 = vld [vmem:[#allocation2 + $0x8c8] sm:$0xff]  }
 0x123   :  { %8171 = vmatprep.subr.bf16.mxu0 %v8892_v13  ;;  %8192 = vmatpush3.bf16.msra.mxu1 %v8891_v12  ;;  %v8918_v12 = vld [vmem:[#allocation2 + $0x808] sm:$0xff]  }
 0x124   :  { %8193 = vmatprep.subr.bf16.mxu1 %v8893_v16  ;;  %v8919_v13 = vld [vmem:[#allocation2 + $0x888] sm:$0xff]   ;;  %v8922_v16 = vld [vmem:[#allocation2 + $0x810] sm:$0xff]  }
 0x126   :  { %8172 = vmatpush3.bf16.msra.mxu0 %v8894_v17  ;;  %v8923_v17 = vld [vmem:[#allocation2 + $0x890] sm:$0xff]  }
 0x127   :  { %8173 = vmatprep.subr.bf16.mxu0 %v8896_v19  ;;  %8194 = vmatpush3.bf16.msra.mxu1 %v8895_v18  ;;  %v8924_v18 = vld [vmem:[#allocation2 + $0x858] sm:$0xff]  }
 0x128   :  { %8195 = vmatprep.subr.bf16.mxu1 %v8897_v21  ;;  %v8925_v19 = vld [vmem:[#allocation2 + $0x8d8] sm:$0xff]  }
 0x129   :  { %v8927_v21 = vld [vmem:[#allocation2 + $0x898] sm:$0xff]  }
 0x12a   :  { %8174 = vmatpush3.bf16.msra.mxu0 %v8898_v22  ;;  %v8928_v22 = vld [vmem:[#allocation2 + $0x860] sm:$0xff]  }
 0x12b   :  { %8175 = vmatprep.subr.bf16.mxu0 %v8900_v25  ;;  %8196 = vmatpush3.bf16.msra.mxu1 %v8899_v23  ;;  %v8929_v23 = vld [vmem:[#allocation2 + $0x8e0] sm:$0xff]  }
 0x12c   :  { %v7873_v28 = vpop.f32.mrb[0].mxu0  ;;  %8197 = vmatprep.subr.bf16.mxu1 %v8901_v29  ;;  %v8931_v25 = vld [vmem:[#allocation2 + $0x8a0] sm:$0xff]  }
 0x12d   :  { %v7874_v34 = vpop.f32.mrb[1].mxu0  ;;  %v7895_v37 = vpop.f32.mrb[0].mxu1 }
 0x12e   :  { %v7875_v39 = vadd.f32 %v7874_v34, %v7873_v28  ;;  %v7876_v40 = vpop.f32.mrb[2].mxu0  ;;  %v7896_v44 = vpop.f32.mrb[1].mxu1  ;;  %8176 = vmatpush3.bf16.msra.mxu0 %v8902_v30  ;;  %v8933_v28 = vld [vmem:[#allocation2 + $0x8e8] sm:$0xff]  }
 0x12f   :  { %v7877_v46 = vpop.f32.mrb[3].mxu0  ;;  %v7897_v49 = vadd.f32 %v7896_v44, %v7895_v37  ;;  %v7898_v50 = vpop.f32.mrb[2].mxu1  ;;  %8177 = vmatprep.subr.bf16.mxu0 %v8904_v36  ;;  %8198 = vmatpush3.bf16.msra.mxu1 %v8903_v45  ;;  %v8934_v37 = vld [vmem:[#allocation2 + $0x828] sm:$0xff]  }
 0x130   :  { %v5858_v48 = vadd.f32 %v7875_v39, %v7280_v27  ;;  %v7899_v54 = vpop.f32.mrb[3].mxu1  ;;  %8199 = vmatprep.subr.bf16.mxu1 %v8905_v47  ;;  %v9539_v27 = vld [vmem:[#allocation5 + $0x20] sm:$0xff]  ;;  %v8935_v40 = vld [vmem:[#allocation2 + $0x8a8] sm:$0xff]   ;;  %v8936_v47 = vld [vmem:[#allocation2 + $0x870] sm:$0xff]  }
 0x131   :  { %v223_v29 = vrot.slane %v9539_v27, %v9401_v31  ;;  %v227_v30 = vrot.slane %v9539_v27, %v9403_v33  ;;  %v231_v32 = vrot.slane %v9539_v27, %v9405_v35  ;;  %v235_v34 = vrot.slane %v9539_v27, %v9407_v38 }
 0x132   :  { %v9537_v59 = vadd.f32 %v7897_v49, %v5858_v48  ;;  %8178 = vmatpush3.bf16.msra.mxu0 %v8906_v51  ;;  %v8937_v48 = vld [vmem:[#allocation2 + $0x8f0] sm:$0xff]  }
 0x133   :  { %8179 = vmatprep.subr.bf16.mxu0 %v8908_v56  ;;  %8200 = vmatpush3.bf16.msra.mxu1 %v8907_v55  ;;  %v516_v41 = vcombine.low %v223_v29, %v227_v30  ;;  %v517_v43 = vcombine.low %v231_v32, %v235_v34  ;;  %v64_v56 = vld [vmem:[%s9739_s0 + $0x40] sm:$0xff]  ;;  %v8951_v29 = vld [vmem:[#allocation2 + $0x988] sm:$0xff]   ;;  %v8952_v34 = vld [vmem:[#allocation2 + $0x950] sm:$0xff]  }
 0x134   :  { %8201 = vmatprep.subr.bf16.mxu1 %v8909_v0 }
 0x135   :  { %v524_v51 = vrot.slane %v516_v41, %v9409_v42  ;;  %v531_v52 = vrot.slane %v517_v43, %v9409_v42  ;;  %v8956_v41 = vld [vmem:[#allocation2 + $0x958] sm:$0xff]  }
 0x136   :  { %8180 = vmatpush3.bf16.msra.mxu0 %v8910_v1  ;;  %v8957_v43 = vld [vmem:[#allocation2 + $0x9d8] sm:$0xff]  }
 0x137   :  { %8209 = vmatprep.subr.bf16.mxu0 %v8912_v4  ;;  %8202 = vmatpush3.bf16.msra.mxu1 %v8911_v3  ;;  %v532_v0 = vcombine.low %v524_v51, %v531_v52  ;;  %v8939_v3 = vld [vmem:[#allocation2 + $0x8b0] sm:$0xff]   ;;  %v8963_v51 = vld [vmem:[#allocation2 + $0x9a0] sm:$0xff]   ;;  %v8964_v52 = vld [vmem:[#allocation2 + $0x968] sm:$0xff]  }
 0x138   :  { %8231 = vmatprep.subr.bf16.mxu1 %v8913_v5  ;;  %v8942_v5 = vld [vmem:[#allocation2 + $0x838] sm:$0xff]  }
 0x139   :  { %6416 = vmatmul.mubr.bf16.vlgmr.msra.gmra.mrb[28].mxu0 %v1164_v6  ;;  %v712_v4 = vadd.f32 %v532_v0, %v64_v56 }
 0x13a   :  { %8210 = vmatpush3.bf16.msra.mxu0 %v8914_v7  ;;  %6456 = vmatmul.mubr.bf16.vlgmr.msra.gmra.mrb[28].mxu1 %v1166_v9  ;;  %v8944_v7 = vld [vmem:[#allocation2 + $0x940] sm:$0xff]  }
 0x13b   :  { %8211 = vmatprep.subr.bf16.mxu0 %v8916_v10  ;;  %8232 = vmatpush3.bf16.msra.mxu1 %v8915_v8  ;;  %v730_v6 = vmax.f32 %v712_v4, 0.0  ;;  %v8943_v8 = vld [vmem:[#allocation2 + $0x8b8] sm:$0xff]   ;;  %v8967_v4 = vld [vmem:[#allocation2 + $0x9a8] sm:$0xff]  }
 0x13c   :  { %8233 = vmatprep.subr.bf16.mxu1 %v8917_v11  ;;  %v8945_v11 = vld [vmem:[#allocation2 + $0x9c0] sm:$0xff]  }
 0x13d   :  { %v901_v9 = vrot.slane %v730_v6, %v9409_v42  ;;  %v894_v10 = vcombine.high %v730_v6, %v730_v6 }
 0x13e   :  { %8212 = vmatpush3.bf16.msra.mxu0 %v8918_v12 }
 0x13f   :  { %8213 = vmatprep.subr.bf16.mxu0 %v8920_v14  ;;  %8234 = vmatpush3.bf16.msra.mxu1 %v8919_v13  ;;  %v909_v12 = vcombine.high %v901_v9, %v901_v9  ;;  %v908_v13 = vrot.slane %v894_v10, %v9409_v42  ;;  %v1168_v14 = vpack.c.bf16 %v901_v9, %v901_v9 }
 0x140   :  { %8235 = vmatprep.subr.bf16.mxu1 %v8921_v15  ;;  %v8946_v15 = vld [vmem:[#allocation2 + $0x900] sm:$0xff]  }
 0x142   :  { %8214 = vmatpush3.bf16.msra.mxu0 %v8922_v16  ;;  %v239_v16 = vrot.slane %v9539_v27, %v9420_v57 }
 0x143   :  { %8215 = vmatprep.subr.bf16.mxu0 %v8924_v18  ;;  %8236 = vmatpush3.bf16.msra.mxu1 %v8923_v17  ;;  %v243_v17 = vrot.slane %v9539_v27, %v9422_v58  ;;  %v1169_v18 = vpack.c.bf16 %v909_v12, %v909_v12  ;;  %v8969_v12 = vld [vmem:[#allocation2 + $0x9f0] sm:$0xff]  }
 0x144   :  { %8237 = vmatprep.subr.bf16.mxu1 %v8925_v19  ;;  %v910_v19 = vcombine.high %v908_v13, %v908_v13 }
 0x145   :  { %6495 = vmatprep.mubr.bf16.mxu0 %v1169_v18  ;;  %v533_v30 = vcombine.low %v239_v16, %v243_v17  ;;  %v8970_v16 = vld [vmem:[#allocation2 + $0x930] sm:$0xff]  }
 0x146   :  { %8216 = vmatpush3.bf16.msra.mxu0 %v8926_v20  ;;  %v8947_v20 = vld [vmem:[#allocation2 + $0x980] sm:$0xff]   ;;  %v8971_v18 = vld [vmem:[#allocation2 + $0x9b0] sm:$0xff]  }
 0x147   :  { %8217 = vmatprep.subr.bf16.mxu0 %v8928_v22  ;;  %8238 = vmatpush3.bf16.msra.mxu1 %v8927_v21  ;;  %v247_v21 = vrot.slane %v9539_v27, %v9425_v61  ;;  %v251_v22 = vrot.slane %v9539_v27, %v9427_v62  ;;  %v8954_v27 = vld [vmem:[#allocation2 + $0x910] sm:$0xff]  }
 0x148   :  { %8239 = vmatprep.subr.bf16.mxu1 %v8929_v23  ;;  %v1170_v23 = vpack.c.bf16 %v908_v13, %v908_v13 }
 0x149   :  { %v534_v32 = vcombine.low %v247_v21, %v251_v22  ;;  %v8972_v21 = vld [vmem:[#allocation2 + $0x978] sm:$0xff]  }
 0x14a   :  { %8218 = vmatpush3.bf16.msra.mxu0 %v8930_v24  ;;  %v8948_v24 = vld [vmem:[#allocation2 + $0x948] sm:$0xff]   ;;  %v8973_v22 = vld [vmem:[#allocation2 + $0x9f8] sm:$0xff]  }
 0x14b   :  { %8219 = vmatprep.subr.bf16.mxu0 %v8932_v26  ;;  %8240 = vmatpush3.bf16.msra.mxu1 %v8931_v25  ;;  %v1171_v25 = vpack.c.bf16 %v910_v19, %v910_v19  ;;  %v8949_v26 = vld [vmem:[#allocation2 + $0x9c8] sm:$0xff]  }
 0x14c   :  { %v7917_v36 = vpop.f32.mrb[4].mxu0  ;;  %8241 = vmatprep.subr.bf16.mxu1 %v8933_v28  ;;  %v8950_v28 = vld [vmem:[#allocation2 + $0x908] sm:$0xff]  }
 0x14d   :  { %v7918_v39 = vpop.f32.mrb[5].mxu0  ;;  %v7939_v44 = vpop.f32.mrb[4].mxu1  ;;  %6535 = vmatprep.mubr.bf16.mxu1 %v1171_v25  ;;  %v8976_v25 = vld [vmem:[#allocation2 + $0xa40] sm:$0xff]  }
 0x14e   :  { %v7919_v45 = vadd.f32 %v7918_v39, %v7917_v36  ;;  %v7920_v46 = vpop.f32.mrb[6].mxu0  ;;  %v7940_v49 = vpop.f32.mrb[5].mxu1  ;;  %8220 = vmatpush3.bf16.msra.mxu0 %v8934_v37  ;;  %v8953_v36 = vld [vmem:[#allocation2 + $0x9d0] sm:$0xff]   ;;  %v541_v39 = vrot.slane %v533_v30, %v9409_v42  ;;  %v8979_v30 = vld [vmem:[#allocation2 + $0xa80] sm:$0xff]  }
 0x14f   :  { %v7921_v50 = vpop.f32.mrb[7].mxu0  ;;  %v7941_v54 = vadd.f32 %v7940_v49, %v7939_v44  ;;  %v7942_v55 = vpop.f32.mrb[6].mxu1  ;;  %8221 = vmatprep.subr.bf16.mxu0 %v8936_v47  ;;  %8242 = vmatpush3.bf16.msra.mxu1 %v8935_v40  ;;  %v8955_v37 = vld [vmem:[#allocation2 + $0x990] sm:$0xff]   ;;  %v548_v40 = vrot.slane %v534_v32, %v9409_v42  ;;  %v8958_v44 = vld [vmem:[#allocation2 + $0x918] sm:$0xff]   ;;  %v8960_v47 = vld [vmem:[#allocation2 + $0x960] sm:$0xff]  }
 0x150   :  { %v5938_v53 = vadd.f32 %v7919_v45, %v9537_v59  ;;  %v7943_v60 = vpop.f32.mrb[7].mxu1  ;;  %8243 = vmatprep.subr.bf16.mxu1 %v8937_v48  ;;  %v8941_v59 = vld [vmem:[#allocation2 + $0x8f8] sm:$0xff]   ;;  %v8961_v48 = vld [vmem:[#allocation2 + $0x9e0] sm:$0xff]   ;;  %v65_v50 = vld [vmem:[%s9739_s0 + $0x48] sm:$0xff] }
 0x151   :  { %v8959_v45 = vld [vmem:[#allocation2 + $0x998] sm:$0xff]   ;;  %v549_v46 = vcombine.low %v541_v39, %v548_v40  ;;  %v8962_v49 = vld [vmem:[#allocation2 + $0x920] sm:$0xff]   ;;  %v8984_v39 = vld [vmem:[#allocation2 + $0xa50] sm:$0xff]  }
 0x152   :  { %v9555_v1 = vadd.f32 %v7941_v54, %v5938_v53  ;;  %8222 = vmatpush3.bf16.msra.mxu0 %v8938_v63  ;;  %v8965_v54 = vld [vmem:[#allocation2 + $0x9e8] sm:$0xff]   ;;  %v8985_v40 = vld [vmem:[#allocation2 + $0xad0] sm:$0xff]  }
 0x153   :  { %8223 = vmatprep.subr.bf16.mxu0 %v8940_v2  ;;  %8244 = vmatpush3.bf16.msra.mxu1 %v8939_v3  ;;  %v713_v53 = vadd.f32 %v549_v46, %v65_v50  ;;  %v8966_v63 = vld [vmem:[#allocation2 + $0x928] sm:$0xff]   ;;  %v8990_v46 = vld [vmem:[#allocation2 + $0xa18] sm:$0xff]   ;;  %v8994_v50 = vld [vmem:[#allocation2 + $0xa20] sm:$0xff]  }
 0x154   :  { %8245 = vmatprep.subr.bf16.mxu1 %v8941_v59  ;;  %v8968_v59 = vld [vmem:[#allocation2 + $0x970] sm:$0xff]  }
 0x155   :  { %v731_v56 = vmax.f32 %v713_v53, 0.0  ;;  %v9577_v53 = vld [vmem:[#allocation5 + $0x28] sm:$0xff] }
 0x156   :  { %8224 = vmatpush3.bf16.msra.mxu0 %v8942_v5 }
 0x157   :  { %8253 = vmatprep.subr.bf16.mxu0 %v8944_v7  ;;  %8246 = vmatpush3.bf16.msra.mxu1 %v8943_v8  ;;  %v918_v5 = vrot.slane %v731_v56, %v9409_v42  ;;  %v911_v6 = vcombine.high %v731_v56, %v731_v56  ;;  %v255_v56 = vrot.slane %v9577_v53, %v9401_v31 }
 0x158   :  { %8275 = vmatprep.subr.bf16.mxu1 %v8945_v11 }
 0x159   :  { %6496 = vmatmul.mubr.bf16.vlgmr.msra.gmra.mrb[32].mxu0 %v1168_v14  ;;  %v926_v13 = vcombine.high %v918_v5, %v918_v5  ;;  %v925_v14 = vrot.slane %v911_v6, %v9409_v42  ;;  %v8999_v6 = vld [vmem:[#allocation2 + $0xaa8] sm:$0xff]  }
 0x15a   :  { %8254 = vmatpush3.bf16.msra.mxu0 %v8946_v15  ;;  %6536 = vmatmul.mubr.bf16.vlgmr.msra.gmra.mrb[32].mxu1 %v1170_v23  ;;  %v8974_v23 = vld [vmem:[#allocation2 + $0x938] sm:$0xff]  }
 0x15b   :  { %8255 = vmatprep.subr.bf16.mxu0 %v8948_v24  ;;  %8276 = vmatpush3.bf16.msra.mxu1 %v8947_v20  ;;  %v1173_v19 = vpack.c.bf16 %v926_v13, %v926_v13  ;;  %v927_v20 = vcombine.high %v925_v14, %v925_v14  ;;  %v8975_v24 = vld [vmem:[#allocation2 + $0x9b8] sm:$0xff]   ;;  %v1174_v32 = vpack.c.bf16 %v925_v14, %v925_v14 }
 0x15c   :  { %8277 = vmatprep.subr.bf16.mxu1 %v8949_v26  ;;  %v8977_v26 = vld [vmem:[#allocation2 + $0xac0] sm:$0xff]  }
 0x15d   :  { %6575 = vmatprep.mubr.bf16.mxu0 %v1173_v19 }
 0x15e   :  { %8256 = vmatpush3.bf16.msra.mxu0 %v8950_v28  ;;  %v1172_v28 = vpack.c.bf16 %v918_v5, %v918_v5 }
 0x15f   :  { %8257 = vmatprep.subr.bf16.mxu0 %v8952_v34  ;;  %8278 = vmatpush3.bf16.msra.mxu1 %v8951_v29  ;;  %v8978_v29 = vld [vmem:[#allocation2 + $0xa00] sm:$0xff]   ;;  %v8980_v34 = vld [vmem:[#allocation2 + $0xa48] sm:$0xff]  }
 0x160   :  { %8279 = vmatprep.subr.bf16.mxu1 %v8953_v36  ;;  %v8981_v36 = vld [vmem:[#allocation2 + $0xac8] sm:$0xff]  }
 0x162   :  { %8258 = vmatpush3.bf16.msra.mxu0 %v8954_v27  ;;  %v8982_v27 = vld [vmem:[#allocation2 + $0xa08] sm:$0xff]  }
 0x163   :  { %8259 = vmatprep.subr.bf16.mxu0 %v8956_v41  ;;  %8280 = vmatpush3.bf16.msra.mxu1 %v8955_v37  ;;  %v8983_v37 = vld [vmem:[#allocation2 + $0xa88] sm:$0xff]   ;;  %v8986_v41 = vld [vmem:[#allocation2 + $0xa10] sm:$0xff]  }
 0x164   :  { %8281 = vmatprep.subr.bf16.mxu1 %v8957_v43  ;;  %v8987_v43 = vld [vmem:[#allocation2 + $0xa90] sm:$0xff]  }
 0x166   :  { %8260 = vmatpush3.bf16.msra.mxu0 %v8958_v44  ;;  %v8988_v44 = vld [vmem:[#allocation2 + $0xa58] sm:$0xff]  }
 0x167   :  { %8261 = vmatprep.subr.bf16.mxu0 %v8960_v47  ;;  %8282 = vmatpush3.bf16.msra.mxu1 %v8959_v45  ;;  %v8989_v45 = vld [vmem:[#allocation2 + $0xad8] sm:$0xff]  }
 0x168   :  { %8283 = vmatprep.subr.bf16.mxu1 %v8961_v48  ;;  %v8991_v47 = vld [vmem:[#allocation2 + $0xa98] sm:$0xff]   ;;  %v8992_v48 = vld [vmem:[#allocation2 + $0xa60] sm:$0xff]  }
 0x16a   :  { %8262 = vmatpush3.bf16.msra.mxu0 %v8962_v49  ;;  %v8993_v49 = vld [vmem:[#allocation2 + $0xae0] sm:$0xff]  }
 0x16b   :  { %8263 = vmatprep.subr.bf16.mxu0 %v8964_v52  ;;  %8284 = vmatpush3.bf16.msra.mxu1 %v8963_v51  ;;  %v8995_v51 = vld [vmem:[#allocation2 + $0xaa0] sm:$0xff]   ;;  %v8996_v52 = vld [vmem:[#allocation2 + $0xa68] sm:$0xff]  }
 0x16c   :  { %v7961_v55 = vpop.f32.mrb[8].mxu0  ;;  %8285 = vmatprep.subr.bf16.mxu1 %v8965_v54 }
 0x16d   :  { %v7962_v60 = vpop.f32.mrb[9].mxu0  ;;  %v7983_v0 = vpop.f32.mrb[8].mxu1 }
 0x16e   :  { %v7963_v2 = vadd.f32 %v7962_v60, %v7961_v55  ;;  %v7964_v3 = vpop.f32.mrb[10].mxu0  ;;  %v7984_v7 = vpop.f32.mrb[9].mxu1  ;;  %8264 = vmatpush3.bf16.msra.mxu0 %v8966_v63  ;;  %v8997_v55 = vld [vmem:[#allocation2 + $0xae8] sm:$0xff]   ;;  %v259_v60 = vrot.slane %v9577_v53, %v9403_v33  ;;  %v263_v63 = vrot.slane %v9577_v53, %v9405_v35 }
 0x16f   :  { %v7965_v8 = vpop.f32.mrb[11].mxu0  ;;  %v7985_v10 = vadd.f32 %v7984_v7, %v7983_v0  ;;  %v7986_v11 = vpop.f32.mrb[10].mxu1  ;;  %8265 = vmatprep.subr.bf16.mxu0 %v8968_v59  ;;  %8286 = vmatpush3.bf16.msra.mxu1 %v8967_v4  ;;  %v267_v0 = vrot.slane %v9577_v53, %v9407_v38  ;;  %v8998_v3 = vld [vmem:[#allocation2 + $0xa28] sm:$0xff]   ;;  %v9000_v7 = vld [vmem:[#allocation2 + $0xa70] sm:$0xff]  }
 0x170   :  { %v6018_v9 = vadd.f32 %v7963_v2, %v9555_v1  ;;  %v7987_v15 = vpop.f32.mrb[11].mxu1  ;;  %v1175_v1 = vpack.c.bf16 %v927_v20, %v927_v20  ;;  %8287 = vmatprep.subr.bf16.mxu1 %v8969_v12  ;;  %v550_v8 = vcombine.low %v255_v56, %v259_v60  ;;  %v66_v20 = vld [vmem:[%s9739_s0 + $0x50] sm:$0xff] }
 0x171   :  { %v9001_v15 = vld [vmem:[#allocation2 + $0xaf0] sm:$0xff]  }
 0x172   :  { %v9575_v17 = vadd.f32 %v7985_v10, %v6018_v9  ;;  %8266 = vmatpush3.bf16.msra.mxu0 %v8970_v16  ;;  %6615 = vmatprep.mubr.bf16.mxu1 %v1175_v1  ;;  %v551_v9 = vcombine.low %v263_v63, %v267_v0  ;;  %v558_v16 = vrot.slane %v550_v8, %v9409_v42  ;;  %v9016_v63 = vld [vmem:[#allocation2 + $0xb50] sm:$0xff]  }
 0x173   :  { %8267 = vmatprep.subr.bf16.mxu0 %v8972_v21  ;;  %8288 = vmatpush3.bf16.msra.mxu1 %v8971_v18  ;;  %v9017_v0 = vld [vmem:[#allocation2 + $0xbd0] sm:$0xff]  }
 0x174   :  { %8289 = vmatprep.subr.bf16.mxu1 %v8973_v22  ;;  %v565_v18 = vrot.slane %v551_v9, %v9409_v42  ;;  %v9002_v22 = vld [vmem:[#allocation2 + $0xa30] sm:$0xff]   ;;  %v9024_v9 = vld [vmem:[#allocation2 + $0xb60] sm:$0xff]  }
 0x176   :  { %8268 = vmatpush3.bf16.msra.mxu0 %v8974_v23  ;;  %v566_v1 = vcombine.low %v558_v16, %v565_v18  ;;  %v9003_v23 = vld [vmem:[#allocation2 + $0xab0] sm:$0xff]   ;;  %v9028_v16 = vld [vmem:[#allocation2 + $0xb68] sm:$0xff]  }
 0x177   :  { %8297 = vmatprep.subr.bf16.mxu0 %v8976_v25  ;;  %8290 = vmatpush3.bf16.msra.mxu1 %v8975_v24  ;;  %v9005_v25 = vld [vmem:[#allocation2 + $0xaf8] sm:$0xff]  }
 0x178   :  { %8319 = vmatprep.subr.bf16.mxu1 %v8977_v26  ;;  %v714_v24 = vadd.f32 %v566_v1, %v66_v20  ;;  %v9006_v26 = vld [vmem:[#allocation2 + $0xa38] sm:$0xff]   ;;  %v9029_v1 = vld [vmem:[#allocation2 + $0xbe8] sm:$0xff]  }
 0x179   :  { %6576 = vmatmul.mubr.bf16.vlgmr.msra.gmra.mrb[36].mxu0 %v1172_v28 }
 0x17a   :  { %8298 = vmatpush3.bf16.msra.mxu0 %v8978_v29  ;;  %6616 = vmatmul.mubr.bf16.vlgmr.msra.gmra.mrb[36].mxu1 %v1174_v32  ;;  %v732_v28 = vmax.f32 %v714_v24, 0.0  ;;  %v9008_v29 = vld [vmem:[#allocation2 + $0xb40] sm:$0xff]  }
 0x17b   :  { %8299 = vmatprep.subr.bf16.mxu0 %v8980_v34  ;;  %8320 = vmatpush3.bf16.msra.mxu1 %v8979_v30  ;;  %v9007_v30 = vld [vmem:[#allocation2 + $0xab8] sm:$0xff]  }
 0x17c   :  { %8321 = vmatprep.subr.bf16.mxu1 %v8981_v36  ;;  %v935_v32 = vrot.slane %v732_v28, %v9409_v42  ;;  %v928_v34 = vcombine.high %v732_v28, %v732_v28  ;;  %v9009_v36 = vld [vmem:[#allocation2 + $0xbc0] sm:$0xff]  }
 0x17e   :  { %8300 = vmatpush3.bf16.msra.mxu0 %v8982_v27  ;;  %v943_v27 = vcombine.high %v935_v32, %v935_v32 }
 0x17f   :  { %8301 = vmatprep.subr.bf16.mxu0 %v8984_v39  ;;  %8322 = vmatpush3.bf16.msra.mxu1 %v8983_v37  ;;  %v942_v37 = vrot.slane %v928_v34, %v9409_v42  ;;  %v1176_v39 = vpack.c.bf16 %v935_v32, %v935_v32  ;;  %v9032_v34 = vld [vmem:[#allocation2 + $0xb70] sm:$0xff]  }
 0x180   :  { %8323 = vmatprep.subr.bf16.mxu1 %v8985_v40  ;;  %v9010_v40 = vld [vmem:[#allocation2 + $0xb00] sm:$0xff]  }
 0x182   :  { %8302 = vmatpush3.bf16.msra.mxu0 %v8986_v41  ;;  %v271_v41 = vrot.slane %v9577_v53, %v9420_v57 }
 0x183   :  { %8303 = vmatprep.subr.bf16.mxu0 %v8988_v44  ;;  %8324 = vmatpush3.bf16.msra.mxu1 %v8987_v43  ;;  %v275_v43 = vrot.slane %v9577_v53, %v9422_v58  ;;  %v1177_v44 = vpack.c.bf16 %v943_v27, %v943_v27 }
 0x184   :  { %8325 = vmatprep.subr.bf16.mxu1 %v8989_v45  ;;  %v944_v45 = vcombine.high %v942_v37, %v942_v37 }
 0x185   :  { %6655 = vmatprep.mubr.bf16.mxu0 %v1177_v44  ;;  %v567_v56 = vcombine.low %v271_v41, %v275_v43  ;;  %v9033_v41 = vld [vmem:[#allocation2 + $0xbf0] sm:$0xff]  }
 0x186   :  { %8304 = vmatpush3.bf16.msra.mxu0 %v8990_v46  ;;  %v9011_v46 = vld [vmem:[#allocation2 + $0xb80] sm:$0xff]   ;;  %v9034_v43 = vld [vmem:[#allocation2 + $0xb30] sm:$0xff]  }
 0x187   :  { %8305 = vmatprep.subr.bf16.mxu0 %v8992_v48  ;;  %8326 = vmatpush3.bf16.msra.mxu1 %v8991_v47  ;;  %v279_v47 = vrot.slane %v9577_v53, %v9425_v61  ;;  %v283_v48 = vrot.slane %v9577_v53, %v9427_v62  ;;  %v9018_v53 = vld [vmem:[#allocation2 + $0xb10] sm:$0xff]  }
 0x188   :  { %8327 = vmatprep.subr.bf16.mxu1 %v8993_v49  ;;  %v1178_v49 = vpack.c.bf16 %v942_v37, %v942_v37 }
 0x189   :  { %v568_v60 = vcombine.low %v279_v47, %v283_v48  ;;  %v9037_v48 = vld [vmem:[#allocation2 + $0xbf8] sm:$0xff]  }
 0x18a   :  { %8306 = vmatpush3.bf16.msra.mxu0 %v8994_v50  ;;  %v9012_v50 = vld [vmem:[#allocation2 + $0xb48] sm:$0xff]  }
 0x18b   :  { %8307 = vmatprep.subr.bf16.mxu0 %v8996_v52  ;;  %8328 = vmatpush3.bf16.msra.mxu1 %v8995_v51  ;;  %v1179_v51 = vpack.c.bf16 %v944_v45, %v944_v45  ;;  %v9013_v52 = vld [vmem:[#allocation2 + $0xbc8] sm:$0xff]  }
 0x18c   :  { %v8005_v54 = vpop.f32.mrb[12].mxu0  ;;  %8329 = vmatprep.subr.bf16.mxu1 %v8997_v55  ;;  %v9015_v55 = vld [vmem:[#allocation2 + $0xb88] sm:$0xff]  }
 0x18d   :  { %v8006_v2 = vpop.f32.mrb[13].mxu0  ;;  %v8027_v4 = vpop.f32.mrb[12].mxu1  ;;  %6695 = vmatprep.mubr.bf16.mxu1 %v1179_v51  ;;  %v9039_v51 = vld [vmem:[#allocation2 + $0xbb8] sm:$0xff]  }
 0x18e   :  { %v8007_v59 = vadd.f32 %v8006_v2, %v8005_v54  ;;  %v8008_v5 = vpop.f32.mrb[14].mxu0  ;;  %v8028_v10 = vpop.f32.mrb[13].mxu1  ;;  %8308 = vmatpush3.bf16.msra.mxu0 %v8998_v3  ;;  %v9014_v54 = vld [vmem:[#allocation2 + $0xb08] sm:$0xff]   ;;  %v9019_v2 = vld [vmem:[#allocation2 + $0xb90] sm:$0xff]   ;;  %v575_v3 = vrot.slane %v567_v56, %v9409_v42 }
 0x18f   :  { %v8009_v11 = vpop.f32.mrb[15].mxu0  ;;  %v8029_v13 = vadd.f32 %v8028_v10, %v8027_v4  ;;  %v8030_v14 = vpop.f32.mrb[14].mxu1  ;;  %8309 = vmatprep.subr.bf16.mxu0 %v9000_v7  ;;  %8330 = vmatpush3.bf16.msra.mxu1 %v8999_v6  ;;  %v582_v4 = vrot.slane %v568_v60, %v9409_v42  ;;  %v9021_v5 = vld [vmem:[#allocation2 + $0xbd8] sm:$0xff]   ;;  %v9025_v10 = vld [vmem:[#allocation2 + $0xbe0] sm:$0xff]   ;;  %v9044_v60 = vld [vmem:[#allocation2 + $0xc48] sm:$0xff]  }
 0x190   :  { %v6098_v12 = vadd.f32 %v8007_v59, %v9575_v17  ;;  %v8031_v19 = vpop.f32.mrb[15].mxu1  ;;  %v9004_v17 = vld [vmem:[#allocation2 + $0xa78] sm:$0xff]   ;;  %8331 = vmatprep.subr.bf16.mxu1 %v9001_v15  ;;  %v9026_v11 = vld [vmem:[#allocation2 + $0xb20] sm:$0xff]  }
 0x191   :  { %v9020_v59 = vld [vmem:[#allocation2 + $0xb58] sm:$0xff]   ;;  %v583_v8 = vcombine.low %v575_v3, %v582_v4  ;;  %v9047_v3 = vld [vmem:[#allocation2 + $0xc88] sm:$0xff]   ;;  %v9049_v4 = vld [vmem:[#allocation2 + $0xcd0] sm:$0xff]  }
 0x192   :  { %v9593_v21 = vadd.f32 %v8029_v13, %v6098_v12  ;;  %8310 = vmatpush3.bf16.msra.mxu0 %v9002_v22  ;;  %v9022_v6 = vld [vmem:[#allocation2 + $0xb18] sm:$0xff]   ;;  %v9027_v13 = vld [vmem:[#allocation2 + $0xba0] sm:$0xff]  }
 0x193   :  { %8311 = vmatprep.subr.bf16.mxu0 %v9004_v17  ;;  %8332 = vmatpush3.bf16.msra.mxu1 %v9003_v23  ;;  %v9023_v7 = vld [vmem:[#allocation2 + $0xb98] sm:$0xff]   ;;  %v9030_v23 = vld [vmem:[#allocation2 + $0xb28] sm:$0xff]  }
 0x194   :  { %8333 = vmatprep.subr.bf16.mxu1 %v9005_v25  ;;  %v67_v12 = vld [vmem:[%s9739_s0 + $0x58] sm:$0xff] }
 0x195   :  { %v715_v14 = vadd.f32 %v583_v8, %v67_v12  ;;  %v9054_v8 = vld [vmem:[#allocation2 + $0xc18] sm:$0xff]   ;;  %v9058_v12 = vld [vmem:[#allocation2 + $0xc20] sm:$0xff]  }
 0x196   :  { %8312 = vmatpush3.bf16.msra.mxu0 %v9006_v26 }
 0x197   :  { %8341 = vmatprep.subr.bf16.mxu0 %v9008_v29  ;;  %8334 = vmatpush3.bf16.msra.mxu1 %v9007_v30  ;;  %v733_v19 = vmax.f32 %v715_v14, 0.0 }
 0x198   :  { %8363 = vmatprep.subr.bf16.mxu1 %v9009_v36  ;;  %v9031_v36 = vld [vmem:[#allocation2 + $0xba8] sm:$0xff]  }
 0x199   :  { %6656 = vmatmul.mubr.bf16.vlgmr.msra.gmra.mrb[40].mxu0 %v1176_v39  ;;  %v952_v26 = vrot.slane %v733_v19, %v9409_v42  ;;  %v945_v28 = vcombine.high %v733_v19, %v733_v19 }
 0x19a   :  { %8342 = vmatpush3.bf16.msra.mxu0 %v9010_v40  ;;  %6696 = vmatmul.mubr.bf16.vlgmr.msra.gmra.mrb[40].mxu1 %v1178_v49  ;;  %v9038_v49 = vld [vmem:[#allocation2 + $0xb38] sm:$0xff]  }
 0x19b   :  { %8343 = vmatprep.subr.bf16.mxu0 %v9012_v50  ;;  %8364 = vmatpush3.bf16.msra.mxu1 %v9011_v46  ;;  %v960_v37 = vcombine.high %v952_v26, %v952_v26  ;;  %v959_v39 = vrot.slane %v945_v28, %v9409_v42  ;;  %v9035_v46 = vld [vmem:[#allocation2 + $0xbb0] sm:$0xff]   ;;  %v9040_v50 = vld [vmem:[#allocation2 + $0xc40] sm:$0xff]  }
 0x19c   :  { %8365 = vmatprep.subr.bf16.mxu1 %v9013_v52  ;;  %v1180_v52 = vpack.c.bf16 %v952_v26, %v952_v26  ;;  %v9062_v26 = vld [vmem:[#allocation2 + $0xc28] sm:$0xff]  }
 0x19d   :  { %v1181_v44 = vpack.c.bf16 %v960_v37, %v960_v37  ;;  %v961_v45 = vcombine.high %v959_v39, %v959_v39  ;;  %v1182_v56 = vpack.c.bf16 %v959_v39, %v959_v39  ;;  %v9064_v39 = vld [vmem:[#allocation2 + $0xc70] sm:$0xff]  }
 0x19e   :  { %8344 = vmatpush3.bf16.msra.mxu0 %v9014_v54  ;;  %v9041_v54 = vld [vmem:[#allocation2 + $0xcc0] sm:$0xff]  }
 0x19f   :  { %8345 = vmatprep.subr.bf16.mxu0 %v9016_v63  ;;  %8366 = vmatpush3.bf16.msra.mxu1 %v9015_v55  ;;  %v1183_v47 = vpack.c.bf16 %v961_v45, %v961_v45  ;;  %v9042_v55 = vld [vmem:[#allocation2 + $0xc00] sm:$0xff]  }
 0x1a0   :  { %8367 = vmatprep.subr.bf16.mxu1 %v9017_v0  ;;  %6735 = vmatprep.mubr.bf16.mxu0 %v1181_v44  ;;  %v9043_v63 = vld [vmem:[#allocation2 + $0xc80] sm:$0xff]   ;;  %v9045_v0 = vld [vmem:[#allocation2 + $0xcc8] sm:$0xff]  }
 0x1a1   :  { %6775 = vmatprep.mubr.bf16.mxu1 %v1183_v47 }
 0x1a2   :  { %8346 = vmatpush3.bf16.msra.mxu0 %v9018_v53  ;;  %v9046_v53 = vld [vmem:[#allocation2 + $0xc08] sm:$0xff]  }
 0x1a3   :  { %8347 = vmatprep.subr.bf16.mxu0 %v9020_v59  ;;  %8368 = vmatpush3.bf16.msra.mxu1 %v9019_v2  ;;  %v9048_v2 = vld [vmem:[#allocation2 + $0xc50] sm:$0xff]  }
 0x1a4   :  { %8369 = vmatprep.subr.bf16.mxu1 %v9021_v5  ;;  %v9050_v59 = vld [vmem:[#allocation2 + $0xc10] sm:$0xff]   ;;  %v9052_v5 = vld [vmem:[#allocation2 + $0xc58] sm:$0xff]  }
 0x1a6   :  { %8348 = vmatpush3.bf16.msra.mxu0 %v9022_v6  ;;  %v9051_v6 = vld [vmem:[#allocation2 + $0xc90] sm:$0xff]  }
 0x1a7   :  { %8349 = vmatprep.subr.bf16.mxu0 %v9024_v9  ;;  %8370 = vmatpush3.bf16.msra.mxu1 %v9023_v7  ;;  %v9053_v7 = vld [vmem:[#allocation2 + $0xcd8] sm:$0xff]   ;;  %v9056_v9 = vld [vmem:[#allocation2 + $0xc60] sm:$0xff]  }
 0x1a8   :  { %8371 = vmatprep.subr.bf16.mxu1 %v9025_v10  ;;  %v9055_v10 = vld [vmem:[#allocation2 + $0xc98] sm:$0xff]  }
 0x1aa   :  { %8350 = vmatpush3.bf16.msra.mxu0 %v9026_v11  ;;  %v9057_v11 = vld [vmem:[#allocation2 + $0xce0] sm:$0xff]  }
 0x1ab   :  { %8351 = vmatprep.subr.bf16.mxu0 %v9028_v16  ;;  %8372 = vmatpush3.bf16.msra.mxu1 %v9027_v13  ;;  %v9060_v13 = vld [vmem:[#allocation2 + $0xc68] sm:$0xff]   ;;  %v9059_v16 = vld [vmem:[#allocation2 + $0xca0] sm:$0xff]  }
 0x1ac   :  { %v8049_v15 = vpop.f32.mrb[16].mxu0  ;;  %8373 = vmatprep.subr.bf16.mxu1 %v9029_v1 }
 0x1ad   :  { %v8050_v18 = vpop.f32.mrb[17].mxu0  ;;  %v8071_v20 = vpop.f32.mrb[16].mxu1 }
 0x1ae   :  { %v8051_v22 = vadd.f32 %v8050_v18, %v8049_v15  ;;  %v8052_v17 = vpop.f32.mrb[18].mxu0  ;;  %v8072_v24 = vpop.f32.mrb[17].mxu1  ;;  %8352 = vmatpush3.bf16.msra.mxu0 %v9030_v23  ;;  %v9615_v15 = vld [vmem:[#allocation5 + $0x30] sm:$0xff] }
 0x1af   :  { %v8053_v25 = vpop.f32.mrb[19].mxu0  ;;  %v8073_v30 = vadd.f32 %v8072_v24, %v8071_v20  ;;  %v8074_v32 = vpop.f32.mrb[18].mxu1  ;;  %8353 = vmatprep.subr.bf16.mxu0 %v9032_v34  ;;  %8374 = vmatpush3.bf16.msra.mxu1 %v9031_v36  ;;  %v287_v19 = vrot.slane %v9615_v15, %v9401_v31  ;;  %v291_v20 = vrot.slane %v9615_v15, %v9403_v33  ;;  %v9061_v24 = vld [vmem:[#allocation2 + $0xce8] sm:$0xff]  }
 0x1b0   :  { %v6178_v29 = vadd.f32 %v8051_v22, %v9593_v21  ;;  %v8075_v27 = vpop.f32.mrb[19].mxu1  ;;  %v9036_v21 = vld [vmem:[#allocation2 + $0xb78] sm:$0xff]   ;;  %8375 = vmatprep.subr.bf16.mxu1 %v9033_v41  ;;  %v295_v22 = vrot.slane %v9615_v15, %v9405_v35  ;;  %v299_v1 = vrot.slane %v9615_v15, %v9407_v38 }
 0x1b1   :  { %v584_v32 = vcombine.low %v287_v19, %v291_v20 }
 0x1b2   :  { %v9613_v40 = vadd.f32 %v8073_v30, %v6178_v29  ;;  %8354 = vmatpush3.bf16.msra.mxu0 %v9034_v43  ;;  %v9063_v29 = vld [vmem:[#allocation2 + $0xca8] sm:$0xff]   ;;  %v585_v34 = vcombine.low %v295_v22, %v299_v1  ;;  %v9065_v43 = vld [vmem:[#allocation2 + $0xcf0] sm:$0xff]  }
 0x1b3   :  { %8355 = vmatprep.subr.bf16.mxu0 %v9036_v21  ;;  %8376 = vmatpush3.bf16.msra.mxu1 %v9035_v46  ;;  %v592_v44 = vrot.slane %v584_v32, %v9409_v42  ;;  %v68_v46 = vld [vmem:[%s9739_s0 + $0x60] sm:$0xff]  ;;  %v9080_v22 = vld [vmem:[#allocation2 + $0xd50] sm:$0xff]  }
 0x1b4   :  { %8377 = vmatprep.subr.bf16.mxu1 %v9037_v48  ;;  %v599_v45 = vrot.slane %v585_v34, %v9409_v42  ;;  %v9068_v48 = vld [vmem:[#allocation2 + $0xc78] sm:$0xff]   ;;  %v9081_v1 = vld [vmem:[#allocation2 + $0xdd0] sm:$0xff]   ;;  %v9088_v32 = vld [vmem:[#allocation2 + $0xd60] sm:$0xff]  }
 0x1b5   :  { %v9089_v34 = vld [vmem:[#allocation2 + $0xde0] sm:$0xff]  }
 0x1b6   :  { %8356 = vmatpush3.bf16.msra.mxu0 %v9038_v49  ;;  %v600_v47 = vcombine.low %v592_v44, %v599_v45  ;;  %v9067_v49 = vld [vmem:[#allocation2 + $0xcb0] sm:$0xff]   ;;  %v9093_v45 = vld [vmem:[#allocation2 + $0xde8] sm:$0xff]  }
 0x1b7   :  { %8385 = vmatprep.subr.bf16.mxu0 %v9040_v50  ;;  %8378 = vmatpush3.bf16.msra.mxu1 %v9039_v51  ;;  %v9069_v51 = vld [vmem:[#allocation2 + $0xcf8] sm:$0xff]  }
 0x1b8   :  { %8407 = vmatprep.subr.bf16.mxu1 %v9041_v54  ;;  %v716_v50 = vadd.f32 %v600_v47, %v68_v46 }
 0x1b9   :  { %6736 = vmatmul.mubr.bf16.vlgmr.msra.gmra.mrb[44].mxu0 %v1180_v52  ;;  %v9070_v52 = vld [vmem:[#allocation2 + $0xc38] sm:$0xff]  }
 0x1ba   :  { %8386 = vmatpush3.bf16.msra.mxu0 %v9042_v55  ;;  %6776 = vmatmul.mubr.bf16.vlgmr.msra.gmra.mrb[44].mxu1 %v1182_v56  ;;  %v734_v54 = vmax.f32 %v716_v50, 0.0  ;;  %v9072_v55 = vld [vmem:[#allocation2 + $0xd40] sm:$0xff]   ;;  %v9071_v56 = vld [vmem:[#allocation2 + $0xcb8] sm:$0xff]  }
 0x1bb   :  { %8387 = vmatprep.subr.bf16.mxu0 %v9044_v60  ;;  %8408 = vmatpush3.bf16.msra.mxu1 %v9043_v63 }
 0x1bc   :  { %8409 = vmatprep.subr.bf16.mxu1 %v9045_v0  ;;  %v969_v60 = vrot.slane %v734_v54, %v9409_v42  ;;  %v962_v63 = vcombine.high %v734_v54, %v734_v54  ;;  %v9073_v0 = vld [vmem:[#allocation2 + $0xdc0] sm:$0xff]  }
 0x1be   :  { %8388 = vmatpush3.bf16.msra.mxu0 %v9046_v53  ;;  %v977_v53 = vcombine.high %v969_v60, %v969_v60 }
 0x1bf   :  { %8389 = vmatprep.subr.bf16.mxu0 %v9048_v2  ;;  %8410 = vmatpush3.bf16.msra.mxu1 %v9047_v3  ;;  %v976_v2 = vrot.slane %v962_v63, %v9409_v42  ;;  %v1184_v3 = vpack.c.bf16 %v969_v60, %v969_v60 }
 0x1c0   :  { %8411 = vmatprep.subr.bf16.mxu1 %v9049_v4  ;;  %v9074_v4 = vld [vmem:[#allocation2 + $0xd00] sm:$0xff]  }
 0x1c2   :  { %8390 = vmatpush3.bf16.msra.mxu0 %v9050_v59  ;;  %v303_v59 = vrot.slane %v9615_v15, %v9420_v57 }
 0x1c3   :  { %8391 = vmatprep.subr.bf16.mxu0 %v9052_v5  ;;  %8412 = vmatpush3.bf16.msra.mxu1 %v9051_v6  ;;  %v307_v5 = vrot.slane %v9615_v15, %v9422_v58  ;;  %v1185_v6 = vpack.c.bf16 %v977_v53, %v977_v53  ;;  %v9096_v53 = vld [vmem:[#allocation2 + $0xd70] sm:$0xff]  }
 0x1c4   :  { %8413 = vmatprep.subr.bf16.mxu1 %v9053_v7  ;;  %v978_v7 = vcombine.high %v976_v2, %v976_v2 }
 0x1c5   :  { %6815 = vmatprep.mubr.bf16.mxu0 %v1185_v6  ;;  %v601_v19 = vcombine.low %v303_v59, %v307_v5  ;;  %v9098_v5 = vld [vmem:[#allocation2 + $0xd30] sm:$0xff]  }
 0x1c6   :  { %8392 = vmatpush3.bf16.msra.mxu0 %v9054_v8  ;;  %v9075_v8 = vld [vmem:[#allocation2 + $0xd80] sm:$0xff]  }
 0x1c7   :  { %8393 = vmatprep.subr.bf16.mxu0 %v9056_v9  ;;  %8414 = vmatpush3.bf16.msra.mxu1 %v9055_v10  ;;  %v311_v9 = vrot.slane %v9615_v15, %v9425_v61  ;;  %v315_v10 = vrot.slane %v9615_v15, %v9427_v62  ;;  %v9082_v15 = vld [vmem:[#allocation2 + $0xd10] sm:$0xff]  }
 0x1c8   :  { %8415 = vmatprep.subr.bf16.mxu1 %v9057_v11  ;;  %v1186_v11 = vpack.c.bf16 %v976_v2, %v976_v2 }
 0x1c9   :  { %v602_v20 = vcombine.low %v311_v9, %v315_v10  ;;  %v9101_v9 = vld [vmem:[#allocation2 + $0xdf8] sm:$0xff]  }
 0x1ca   :  { %8394 = vmatpush3.bf16.msra.mxu0 %v9058_v12  ;;  %v9076_v12 = vld [vmem:[#allocation2 + $0xd48] sm:$0xff]  }
 0x1cb   :  { %8395 = vmatprep.subr.bf16.mxu0 %v9060_v13  ;;  %8416 = vmatpush3.bf16.msra.mxu1 %v9059_v16  ;;  %v1187_v13 = vpack.c.bf16 %v978_v7, %v978_v7  ;;  %v9078_v16 = vld [vmem:[#allocation2 + $0xd08] sm:$0xff]  }
 0x1cc   :  { %v8093_v14 = vpop.f32.mrb[20].mxu0  ;;  %8417 = vmatprep.subr.bf16.mxu1 %v9061_v24  ;;  %v616_v24 = vrot.slane %v602_v20, %v9409_v42 }
 0x1cd   :  { %v8094_v18 = vpop.f32.mrb[21].mxu0  ;;  %v8115_v17 = vpop.f32.mrb[20].mxu1  ;;  %6855 = vmatprep.mubr.bf16.mxu1 %v1187_v13  ;;  %v9104_v13 = vld [vmem:[#allocation2 + $0xe40] sm:$0xff]  }
 0x1ce   :  { %v8095_v23 = vadd.f32 %v8094_v18, %v8093_v14  ;;  %v8096_v25 = vpop.f32.mrb[22].mxu0  ;;  %v8116_v28 = vpop.f32.mrb[21].mxu1  ;;  %8396 = vmatpush3.bf16.msra.mxu0 %v9062_v26  ;;  %v9077_v14 = vld [vmem:[#allocation2 + $0xdc8] sm:$0xff]   ;;  %v9085_v26 = vld [vmem:[#allocation2 + $0xdd8] sm:$0xff]  }
 0x1cf   :  { %v8097_v30 = vpop.f32.mrb[23].mxu0  ;;  %v8117_v27 = vadd.f32 %v8116_v28, %v8115_v17  ;;  %v8118_v37 = vpop.f32.mrb[22].mxu1  ;;  %8397 = vmatprep.subr.bf16.mxu0 %v9064_v39  ;;  %8418 = vmatpush3.bf16.msra.mxu1 %v9063_v29  ;;  %v9079_v18 = vld [vmem:[#allocation2 + $0xd88] sm:$0xff]   ;;  %v9083_v17 = vld [vmem:[#allocation2 + $0xd90] sm:$0xff]   ;;  %v9084_v25 = vld [vmem:[#allocation2 + $0xd58] sm:$0xff]  }
 0x1d0   :  { %v6258_v36 = vadd.f32 %v8095_v23, %v9613_v40  ;;  %v8119_v41 = vpop.f32.mrb[23].mxu1  ;;  %v9066_v40 = vld [vmem:[#allocation2 + $0xc30] sm:$0xff]   ;;  %8419 = vmatprep.subr.bf16.mxu1 %v9065_v43  ;;  %v609_v23 = vrot.slane %v601_v19, %v9409_v42  ;;  %v9086_v28 = vld [vmem:[#allocation2 + $0xd18] sm:$0xff]   ;;  %v9091_v37 = vld [vmem:[#allocation2 + $0xda0] sm:$0xff]  }
 0x1d1   :  { %v9087_v29 = vld [vmem:[#allocation2 + $0xd98] sm:$0xff]   ;;  %v9092_v41 = vld [vmem:[#allocation2 + $0xd68] sm:$0xff]   ;;  %v9107_v19 = vld [vmem:[#allocation2 + $0xe80] sm:$0xff]  }
 0x1d2   :  { %v9628_v21 = vadd.f32 %v8117_v27, %v6258_v36  ;;  %8398 = vmatpush3.bf16.msra.mxu0 %v9066_v40  ;;  %v617_v30 = vcombine.low %v609_v23, %v616_v24  ;;  %v9090_v36 = vld [vmem:[#allocation2 + $0xd20] sm:$0xff]   ;;  %v69_v27 = vld [vmem:[%s9739_s0 + $0x68] sm:$0xff]  ;;  %v9112_v23 = vld [vmem:[#allocation2 + $0xe50] sm:$0xff]  }
 0x1d3   :  { %8399 = vmatprep.subr.bf16.mxu0 %v9068_v48  ;;  %8420 = vmatpush3.bf16.msra.mxu1 %v9067_v49  ;;  %v9094_v48 = vld [vmem:[#allocation2 + $0xd28] sm:$0xff]   ;;  %v9113_v24 = vld [vmem:[#allocation2 + $0xed0] sm:$0xff]  }
 0x1d4   :  { %8421 = vmatprep.subr.bf16.mxu1 %v9069_v51  ;;  %v717_v43 = vadd.f32 %v617_v30, %v69_v27  ;;  %v9118_v30 = vld [vmem:[#allocation2 + $0xe18] sm:$0xff]   ;;  %v9122_v27 = vld [vmem:[#allocation2 + $0xe20] sm:$0xff]  }
 0x1d6   :  { %8400 = vmatpush3.bf16.msra.mxu0 %v9070_v52  ;;  %v735_v49 = vmax.f32 %v717_v43, 0.0 }
 0x1d7   :  { %8429 = vmatprep.subr.bf16.mxu0 %v9072_v55  ;;  %8422 = vmatpush3.bf16.msra.mxu1 %v9071_v56  ;;  %v9095_v56 = vld [vmem:[#allocation2 + $0xda8] sm:$0xff]  }
 0x1d8   :  { %8451 = vmatprep.subr.bf16.mxu1 %v9073_v0  ;;  %v986_v60 = vrot.slane %v735_v49, %v9409_v42  ;;  %v979_v63 = vcombine.high %v735_v49, %v735_v49 }
 0x1d9   :  { %6816 = vmatmul.mubr.bf16.vlgmr.msra.gmra.mrb[48].mxu0 %v1184_v3  ;;  %v9097_v3 = vld [vmem:[#allocation2 + $0xdf0] sm:$0xff]  }
 0x1da   :  { %8430 = vmatpush3.bf16.msra.mxu0 %v9074_v4  ;;  %6856 = vmatmul.mubr.bf16.vlgmr.msra.gmra.mrb[48].mxu1 %v1186_v11  ;;  %v994_v4 = vcombine.high %v986_v60, %v986_v60  ;;  %v993_v59 = vrot.slane %v979_v63, %v9409_v42  ;;  %v9102_v11 = vld [vmem:[#allocation2 + $0xd38] sm:$0xff]  }
 0x1db   :  { %8431 = vmatprep.subr.bf16.mxu0 %v9076_v12  ;;  %8452 = vmatpush3.bf16.msra.mxu1 %v9075_v8  ;;  %v9100_v8 = vld [vmem:[#allocation2 + $0xd78] sm:$0xff]  }
 0x1dc   :  { %8453 = vmatprep.subr.bf16.mxu1 %v9077_v14  ;;  %v1189_v6 = vpack.c.bf16 %v994_v4, %v994_v4  ;;  %v995_v7 = vcombine.high %v993_v59, %v993_v59  ;;  %v9103_v12 = vld [vmem:[#allocation2 + $0xdb8] sm:$0xff]   ;;  %v9105_v14 = vld [vmem:[#allocation2 + $0xec0] sm:$0xff]   ;;  %v1190_v20 = vpack.c.bf16 %v993_v59, %v993_v59  ;;  %v9128_v4 = vld [vmem:[#allocation2 + $0xe70] sm:$0xff]  }
 0x1de   :  { %8432 = vmatpush3.bf16.msra.mxu0 %v9078_v16  ;;  %6895 = vmatprep.mubr.bf16.mxu0 %v1189_v6  ;;  %v1191_v10 = vpack.c.bf16 %v995_v7, %v995_v7  ;;  %v1188_v16 = vpack.c.bf16 %v986_v60, %v986_v60  ;;  %v9130_v7 = vld [vmem:[#allocation2 + $0xe30] sm:$0xff]  }
 0x1df   :  { %8433 = vmatprep.subr.bf16.mxu0 %v9080_v22  ;;  %8454 = vmatpush3.bf16.msra.mxu1 %v9079_v18  ;;  %v9106_v18 = vld [vmem:[#allocation2 + $0xe00] sm:$0xff]   ;;  %v9108_v22 = vld [vmem:[#allocation2 + $0xe48] sm:$0xff]  }
 0x1e0   :  { %8455 = vmatprep.subr.bf16.mxu1 %v9081_v1  ;;  %6935 = vmatprep.mubr.bf16.mxu1 %v1191_v10  ;;  %v9109_v1 = vld [vmem:[#allocation2 + $0xec8] sm:$0xff]  }
 0x1e2   :  { %8434 = vmatpush3.bf16.msra.mxu0 %v9082_v15  ;;  %v9110_v15 = vld [vmem:[#allocation2 + $0xe08] sm:$0xff]  }
 0x1e3   :  { %8435 = vmatprep.subr.bf16.mxu0 %v9084_v25  ;;  %8456 = vmatpush3.bf16.msra.mxu1 %v9083_v17  ;;  %v9111_v17 = vld [vmem:[#allocation2 + $0xe88] sm:$0xff]   ;;  %v9114_v25 = vld [vmem:[#allocation2 + $0xe10] sm:$0xff]  }
 0x1e4   :  { %8457 = vmatprep.subr.bf16.mxu1 %v9085_v26  ;;  %v9115_v26 = vld [vmem:[#allocation2 + $0xe90] sm:$0xff]  }
 0x1e6   :  { %8436 = vmatpush3.bf16.msra.mxu0 %v9086_v28  ;;  %v9116_v28 = vld [vmem:[#allocation2 + $0xe58] sm:$0xff]  }
 0x1e7   :  { %8437 = vmatprep.subr.bf16.mxu0 %v9088_v32  ;;  %8458 = vmatpush3.bf16.msra.mxu1 %v9087_v29  ;;  %v9117_v29 = vld [vmem:[#allocation2 + $0xed8] sm:$0xff]  }
 0x1e8   :  { %8459 = vmatprep.subr.bf16.mxu1 %v9089_v34  ;;  %v9119_v32 = vld [vmem:[#allocation2 + $0xe98] sm:$0xff]   ;;  %v9120_v34 = vld [vmem:[#allocation2 + $0xe60] sm:$0xff]  }
 0x1ea   :  { %8438 = vmatpush3.bf16.msra.mxu0 %v9090_v36  ;;  %v9121_v36 = vld [vmem:[#allocation2 + $0xee0] sm:$0xff]  }
 0x1eb   :  { %8439 = vmatprep.subr.bf16.mxu0 %v9092_v41  ;;  %8460 = vmatpush3.bf16.msra.mxu1 %v9091_v37  ;;  %v9123_v37 = vld [vmem:[#allocation2 + $0xea0] sm:$0xff]   ;;  %v9124_v41 = vld [vmem:[#allocation2 + $0xe68] sm:$0xff]  }
 0x1ec   :  { %v8137_v39 = vpop.f32.mrb[24].mxu0  ;;  %8461 = vmatprep.subr.bf16.mxu1 %v9093_v45 }
 0x1ed   :  { %v8138_v44 = vpop.f32.mrb[25].mxu0  ;;  %v8159_v46 = vpop.f32.mrb[24].mxu1 }
 0x1ee   :  { %v8139_v40 = vadd.f32 %v8138_v44, %v8137_v39  ;;  %v8140_v47 = vpop.f32.mrb[26].mxu0  ;;  %v8160_v50 = vpop.f32.mrb[25].mxu1  ;;  %8440 = vmatpush3.bf16.msra.mxu0 %v9094_v48  ;;  %v9653_v44 = vld [vmem:[#allocation5 + $0x38] sm:$0xff]  ;;  %v9126_v48 = vld [vmem:[#allocation2 + $0xe28] sm:$0xff]  }
 0x1ef   :  { %v8141_v51 = vpop.f32.mrb[27].mxu0  ;;  %v8161_v54 = vadd.f32 %v8160_v50, %v8159_v46  ;;  %v8162_v55 = vpop.f32.mrb[26].mxu1  ;;  %8441 = vmatprep.subr.bf16.mxu0 %v9096_v53  ;;  %8462 = vmatpush3.bf16.msra.mxu1 %v9095_v56  ;;  %v319_v49 = vrot.slane %v9653_v44, %v9401_v31  ;;  %v323_v50 = vrot.slane %v9653_v44, %v9403_v33 }
 0x1f0   :  { %v6338_v52 = vadd.f32 %v8139_v40, %v9628_v21  ;;  %v8163_v0 = vpop.f32.mrb[27].mxu1  ;;  %v9099_v21 = vld [vmem:[#allocation2 + $0xdb0] sm:$0xff]   ;;  %8463 = vmatprep.subr.bf16.mxu1 %v9097_v3  ;;  %v9125_v40 = vld [vmem:[#allocation2 + $0xee8] sm:$0xff]   ;;  %v327_v51 = vrot.slane %v9653_v44, %v9405_v35  ;;  %v331_v55 = vrot.slane %v9653_v44, %v9407_v38 }
 0x1f1   :  { %v9127_v0 = vld [vmem:[#allocation2 + $0xea8] sm:$0xff]   ;;  %v618_v53 = vcombine.low %v319_v49, %v323_v50  ;;  %v9147_v50 = vld [vmem:[#allocation2 + $0xf90] sm:$0xff]  }
 0x1f2   :  { %v9650_v2 = vadd.f32 %v8161_v54, %v6338_v52  ;;  %8442 = vmatpush3.bf16.msra.mxu0 %v9098_v5  ;;  %v619_v59 = vcombine.low %v327_v51, %v331_v55  ;;  %v9148_v51 = vld [vmem:[#allocation2 + $0xf58] sm:$0xff]  }
 0x1f3   :  { %8443 = vmatprep.subr.bf16.mxu0 %v9100_v8  ;;  %8464 = vmatpush3.bf16.msra.mxu1 %v9099_v21  ;;  %v9129_v21 = vld [vmem:[#allocation2 + $0xef0] sm:$0xff]   ;;  %v626_v6 = vrot.slane %v618_v53, %v9409_v42  ;;  %v9154_v53 = vld [vmem:[#allocation2 + $0xf20] sm:$0xff]  }
 0x1f4   :  { %8465 = vmatprep.subr.bf16.mxu1 %v9101_v9  ;;  %v633_v8 = vrot.slane %v619_v59, %v9409_v42  ;;  %v9132_v9 = vld [vmem:[#allocation2 + $0xe78] sm:$0xff]   ;;  %v9155_v59 = vld [vmem:[#allocation2 + $0xfa0] sm:$0xff]  }
 0x1f6   :  { %8444 = vmatpush3.bf16.msra.mxu0 %v9102_v11  ;;  %v634_v10 = vcombine.low %v626_v6, %v633_v8  ;;  %v9131_v11 = vld [vmem:[#allocation2 + $0xeb0] sm:$0xff]   ;;  %v9156_v8 = vld [vmem:[#allocation2 + $0xf68] sm:$0xff]  }
 0x1f7   :  { %8473 = vmatprep.subr.bf16.mxu0 %v9104_v13  ;;  %8466 = vmatpush3.bf16.msra.mxu1 %v9103_v12  ;;  %v9133_v12 = vld [vmem:[#allocation2 + $0xef8] sm:$0xff]  }
 0x1f8   :  { %8495 = vmatprep.subr.bf16.mxu1 %v9105_v14  ;;  %v9134_v14 = vld [vmem:[#allocation2 + $0xe38] sm:$0xff]  }
 0x1f9   :  { %6896 = vmatmul.mubr.bf16.vlgmr.msra.gmra.mrb[52].mxu0 %v1188_v16 }
 0x1fa   :  { %8474 = vmatpush3.bf16.msra.mxu0 %v9106_v18  ;;  %6936 = vmatmul.mubr.bf16.vlgmr.msra.gmra.mrb[52].mxu1 %v1190_v20  ;;  %v9136_v18 = vld [vmem:[#allocation2 + $0xf40] sm:$0xff]  }
 0x1fb   :  { %8475 = vmatprep.subr.bf16.mxu0 %v9108_v22  ;;  %8496 = vmatpush3.bf16.msra.mxu1 %v9107_v19  ;;  %v9135_v19 = vld [vmem:[#allocation2 + $0xeb8] sm:$0xff]  }
 0x1fc   :  { %8497 = vmatprep.subr.bf16.mxu1 %v9109_v1  ;;  %v9137_v1 = vld [vmem:[#allocation2 + $0xfc0] sm:$0xff]  }
 0x1fe   :  { %8476 = vmatpush3.bf16.msra.mxu0 %v9110_v15 }
 0x1ff   :  { %8477 = vmatprep.subr.bf16.mxu0 %v9112_v23  ;;  %8498 = vmatpush3.bf16.msra.mxu1 %v9111_v17  ;;  %v335_v23 = vrot.slane %v9653_v44, %v9420_v57 }
 0x200   :  { %8499 = vmatprep.subr.bf16.mxu1 %v9113_v24 }
 0x202   :  { %8478 = vmatpush3.bf16.msra.mxu0 %v9114_v25  ;;  %v9138_v25 = vld [vmem:[#allocation2 + $0xf00] sm:$0xff]  }
 0x203   :  { %8479 = vmatprep.subr.bf16.mxu0 %v9116_v28  ;;  %8500 = vmatpush3.bf16.msra.mxu1 %v9115_v26  ;;  %v339_v26 = vrot.slane %v9653_v44, %v9422_v58  ;;  %v343_v28 = vrot.slane %v9653_v44, %v9425_v61 }
 0x204   :  { %8501 = vmatprep.subr.bf16.mxu1 %v9117_v29  ;;  %v347_v29 = vrot.slane %v9653_v44, %v9427_v62  ;;  %v9145_v44 = vld [vmem:[#allocation2 + $0xfd0] sm:$0xff]  }
 0x206   :  { %8480 = vmatpush3.bf16.msra.mxu0 %v9118_v30 }
 0x207   :  { %8481 = vmatprep.subr.bf16.mxu0 %v9120_v34  ;;  %8502 = vmatpush3.bf16.msra.mxu1 %v9119_v32  ;;  %v9139_v34 = vld [vmem:[#allocation2 + $0xf80] sm:$0xff]  }
 0x208   :  { %8503 = vmatprep.subr.bf16.mxu1 %v9121_v36 }
 0x20a   :  { %8482 = vmatpush3.bf16.msra.mxu0 %v9122_v27  ;;  %v9140_v27 = vld [vmem:[#allocation2 + $0xf48] sm:$0xff]  }
 0x20b   :  { %8483 = vmatprep.subr.bf16.mxu0 %v9124_v41  ;;  %8504 = vmatpush3.bf16.msra.mxu1 %v9123_v37  ;;  %v9142_v41 = vld [vmem:[#allocation2 + $0xf08] sm:$0xff]  }
 0x20c   :  { %v8181_v39 = vpop.f32.mrb[28].mxu0  ;;  %8505 = vmatprep.subr.bf16.mxu1 %v9125_v40  ;;  %v9144_v40 = vld [vmem:[#allocation2 + $0xf50] sm:$0xff]  }
 0x20d   :  { %v8182_v43 = vpop.f32.mrb[29].mxu0  ;;  %v8203_v45 = vpop.f32.mrb[28].mxu1 }
 0x20e   :  { %v8183_v46 = vadd.f32 %v8182_v43, %v8181_v39  ;;  %v8184_v47 = vpop.f32.mrb[30].mxu0  ;;  %v8204_v52 = vpop.f32.mrb[29].mxu1  ;;  %8484 = vmatpush3.bf16.msra.mxu0 %v9126_v48  ;;  %v9141_v39 = vld [vmem:[#allocation2 + $0xfc8] sm:$0xff]   ;;  %v635_v43 = vcombine.low %v335_v23, %v339_v26 }
 0x20f   :  { %v8185_v54 = vpop.f32.mrb[31].mxu0  ;;  %v8205_v60 = vadd.f32 %v8204_v52, %v8203_v45  ;;  %v8206_v63 = vpop.f32.mrb[30].mxu1  ;;  %8485 = vmatprep.subr.bf16.mxu0 %v9128_v4  ;;  %8506 = vmatpush3.bf16.msra.mxu1 %v9127_v0  ;;  %v636_v45 = vcombine.low %v343_v28, %v347_v29  ;;  %v9146_v47 = vld [vmem:[#allocation2 + $0xf10] sm:$0xff]   ;;  %v9149_v52 = vld [vmem:[#allocation2 + $0xfd8] sm:$0xff]  }
 0x210   :  { %v6418_v56 = vadd.f32 %v8183_v46, %v9650_v2  ;;  %v8207_v3 = vpop.f32.mrb[31].mxu1  ;;  %v70_v2 = vld [vmem:[%s9739_s0 + $0x70] sm:$0xff]  ;;  %8507 = vmatprep.subr.bf16.mxu1 %v9129_v21  ;;  %v9143_v46 = vld [vmem:[#allocation2 + $0xf88] sm:$0xff]   ;;  %v643_v48 = vrot.slane %v635_v43, %v9409_v42  ;;  %v9150_v54 = vld [vmem:[#allocation2 + $0xf18] sm:$0xff]  }
 0x211   :  { %v718_v13 = vadd.f32 %v634_v10, %v70_v2  ;;  %v650_v49 = vrot.slane %v636_v45, %v9409_v42  ;;  %v9153_v63 = vld [vmem:[#allocation2 + $0xfe0] sm:$0xff]   ;;  %v71_v0 = vld [vmem:[%s9739_s0 + $0x78] sm:$0xff]  ;;  %v9162_v28 = vld [vmem:[#allocation2 + $0xf30] sm:$0xff]  }
 0x212   :  { %v9664_v5 = vadd.f32 %v8205_v60, %v6418_v56  ;;  %8486 = vmatpush3.bf16.msra.mxu0 %v9130_v7  ;;  %v9151_v56 = vld [vmem:[#allocation2 + $0xf98] sm:$0xff]   ;;  %v9152_v60 = vld [vmem:[#allocation2 + $0xf60] sm:$0xff]  }
 0x213   :  { %8487 = vmatprep.subr.bf16.mxu0 %v9132_v9  ;;  %v736_v16 = vmax.f32 %v718_v13, 0.0  ;;  %8508 = vmatpush3.bf16.msra.mxu1 %v9131_v11  ;;  %v651_v55 = vcombine.low %v643_v48, %v650_v49  ;;  %v9164_v29 = vld [vmem:[#allocation2 + $0xf78] sm:$0xff]   ;;  %v9170_v43 = vld [vmem:[#allocation2 + $0x1000] sm:$0xff]   ;;  %v9176_v48 = vld [vmem:[#allocation2 + $0x1050] sm:$0xff]  }
 0x214   :  { %8509 = vmatprep.subr.bf16.mxu1 %v9133_v12  ;;  %v9175_v49 = vld [vmem:[#allocation2 + $0x1088] sm:$0xff]  }
 0x215   :  { %v1003_v20 = vrot.slane %v736_v16, %v9409_v42  ;;  %v996_v22 = vcombine.high %v736_v16, %v736_v16  ;;  %v719_v4 = vadd.f32 %v651_v55, %v71_v0  ;;  %v9181_v55 = vld [vmem:[#allocation2 + $0x10d8] sm:$0xff]   ;;  %v9185_v0 = vld [vmem:[#allocation2 + $0x10e0] sm:$0xff]  }
 0x216   :  { %8488 = vmatpush3.bf16.msra.mxu0 %v9134_v14  ;;  %v9157_v14 = vld [vmem:[#allocation2 + $0xfe8] sm:$0xff]  }
 0x217   :  { %v1011_v15 = vcombine.high %v1003_v20, %v1003_v20  ;;  %v1010_v17 = vrot.slane %v996_v22, %v9409_v42  ;;  %8517 = vmatprep.subr.bf16.mxu0 %v9136_v18  ;;  %8510 = vmatpush3.bf16.msra.mxu1 %v9135_v19  ;;  %v1192_v24 = vpack.c.bf16 %v1003_v20, %v1003_v20  ;;  %v737_v9 = vmax.f32 %v719_v4, 0.0  ;;  %v9158_v20 = vld [vmem:[#allocation2 + $0xf28] sm:$0xff]   ;;  %v9187_v4 = vld [vmem:[#allocation2 + $0x10a0] sm:$0xff]  }
 0x218   :  { %8539 = vmatprep.subr.bf16.mxu1 %v9137_v1 }
 0x219   :  { %v1193_v30 = vpack.c.bf16 %v1011_v15, %v1011_v15  ;;  %v1012_v32 = vcombine.high %v1010_v17, %v1010_v17  ;;  %v1194_v36 = vpack.c.bf16 %v1010_v17, %v1010_v17  ;;  %v1020_v18 = vrot.slane %v737_v9, %v9409_v42  ;;  %v9160_v15 = vld [vmem:[#allocation2 + $0xf70] sm:$0xff]  }
 0x21a   :  { %v1013_v19 = vcombine.high %v737_v9, %v737_v9 }
 0x21b   :  { %6975 = vmatprep.mubr.bf16.mxu0 %v1193_v30  ;;  %v1195_v37 = vpack.c.bf16 %v1012_v32, %v1012_v32  ;;  %v1028_v17 = vcombine.high %v1020_v18, %v1020_v18  ;;  %v9163_v32 = vld [vmem:[#allocation2 + $0xfb0] sm:$0xff]  }
 0x21c   :  { %6976 = vmatmul.mubr.bf16.vlgmr.msra.gmra.mrb[56].mxu0 %v1192_v24  ;;  %v1027_v23 = vrot.slane %v1013_v19, %v9409_v42  ;;  %v9159_v24 = vld [vmem:[#allocation2 + $0xfa8] sm:$0xff]  }
 0x21d   :  { %7015 = vmatprep.mubr.bf16.mxu1 %v1195_v37  ;;  %8518 = vmatpush3.bf16.msra.mxu0 %v9138_v25  ;;  %v1197_v25 = vpack.c.bf16 %v1028_v17, %v1028_v17  ;;  %v9167_v37 = vld [vmem:[#allocation2 + $0xfb8] sm:$0xff]  }
 0x21e   :  { %7016 = vmatmul.mubr.bf16.vlgmr.msra.gmra.mrb[56].mxu1 %v1194_v36  ;;  %8519 = vmatprep.subr.bf16.mxu0 %v9140_v27  ;;  %v1029_v26 = vcombine.high %v1027_v23, %v1027_v23  ;;  %v9166_v36 = vld [vmem:[#allocation2 + $0xf38] sm:$0xff]   ;;  %v9168_v27 = vld [vmem:[#allocation2 + $0x1040] sm:$0xff]   ;;  %v1198_v45 = vpack.c.bf16 %v1027_v23, %v1027_v23 }
 0x21f   :  { %8540 = vmatpush3.bf16.msra.mxu1 %v9139_v34  ;;  %7055 = vmatprep.mubr.bf16.mxu0 %v1197_v25  ;;  %v9165_v34 = vld [vmem:[#allocation2 + $0xff8] sm:$0xff]   ;;  %v9194_v25 = vld [vmem:[#allocation2 + $0x1030] sm:$0xff]  }
 0x220   :  { %8541 = vmatprep.subr.bf16.mxu1 %v9141_v39  ;;  %v1199_v30 = vpack.c.bf16 %v1029_v26, %v1029_v26  ;;  %v1196_v39 = vpack.c.bf16 %v1020_v18, %v1020_v18 }
 0x221   :  { %8520 = vmatpush3.bf16.msra.mxu0 %v9142_v41  ;;  %v9169_v41 = vld [vmem:[#allocation2 + $0x10c0] sm:$0xff]  }
 0x222   :  { %8521 = vmatprep.subr.bf16.mxu0 %v9144_v40  ;;  %7095 = vmatprep.mubr.bf16.mxu1 %v1199_v30  ;;  %v9171_v40 = vld [vmem:[#allocation2 + $0x1080] sm:$0xff]  }
 0x223   :  { %8542 = vmatpush3.bf16.msra.mxu1 %v9143_v46  ;;  %v9172_v46 = vld [vmem:[#allocation2 + $0x1048] sm:$0xff]  }
 0x224   :  { %8543 = vmatprep.subr.bf16.mxu1 %v9145_v44  ;;  %v9173_v44 = vld [vmem:[#allocation2 + $0x10c8] sm:$0xff]  }
 0x225   :  { %8522 = vmatpush3.bf16.msra.mxu0 %v9146_v47  ;;  %v9174_v47 = vld [vmem:[#allocation2 + $0x1008] sm:$0xff]  }
 0x226   :  { %8523 = vmatprep.subr.bf16.mxu0 %v9148_v51  ;;  %v9178_v51 = vld [vmem:[#allocation2 + $0x1010] sm:$0xff]  }
 0x227   :  { %8544 = vmatpush3.bf16.msra.mxu1 %v9147_v50  ;;  %v9177_v50 = vld [vmem:[#allocation2 + $0x10d0] sm:$0xff]  }
 0x228   :  { %8545 = vmatprep.subr.bf16.mxu1 %v9149_v52  ;;  %v9180_v52 = vld [vmem:[#allocation2 + $0x1058] sm:$0xff]  }
 0x229   :  { %8524 = vmatpush3.bf16.msra.mxu0 %v9150_v54  ;;  %v9179_v54 = vld [vmem:[#allocation2 + $0x1090] sm:$0xff]  }
 0x22a   :  { %8525 = vmatprep.subr.bf16.mxu0 %v9152_v60  ;;  %v9184_v60 = vld [vmem:[#allocation2 + $0x1060] sm:$0xff]  }
 0x22b   :  { %8546 = vmatpush3.bf16.msra.mxu1 %v9151_v56  ;;  %v9182_v56 = vld [vmem:[#allocation2 + $0x1018] sm:$0xff]  }
 0x22c   :  { %v8225_v3 = vpop.f32.mrb[32].mxu0  ;;  %8547 = vmatprep.subr.bf16.mxu1 %v9153_v63  ;;  %v9183_v63 = vld [vmem:[#allocation2 + $0x1098] sm:$0xff]  }
 0x22d   :  { %v8226_v21 = vpop.f32.mrb[33].mxu0  ;;  %v8247_v6 = vpop.f32.mrb[32].mxu1  ;;  %8526 = vmatpush3.bf16.msra.mxu0 %v9154_v53  ;;  %v9186_v53 = vld [vmem:[#allocation2 + $0x1020] sm:$0xff]  }
 0x22e   :  { %v8227_v7 = vadd.f32 %v8226_v21, %v8225_v3  ;;  %v8228_v2 = vpop.f32.mrb[34].mxu0  ;;  %v8248_v10 = vpop.f32.mrb[33].mxu1  ;;  %8527 = vmatprep.subr.bf16.mxu0 %v9156_v8  ;;  %v9691_v21 = vld [vmem:[#allocation5 + $0x40] sm:$0xff]  ;;  %v9188_v8 = vld [vmem:[#allocation2 + $0x1068] sm:$0xff]  }
 0x22f   :  { %v8229_v11 = vpop.f32.mrb[35].mxu0  ;;  %v8249_v13 = vadd.f32 %v8248_v10, %v8247_v6  ;;  %v8250_v16 = vpop.f32.mrb[34].mxu1  ;;  %8548 = vmatpush3.bf16.msra.mxu1 %v9155_v59  ;;  %v9189_v2 = vld [vmem:[#allocation2 + $0x10e8] sm:$0xff]   ;;  %v351_v10 = vrot.slane %v9691_v21, %v9401_v31 }
 0x230   :  { %v6498_v12 = vadd.f32 %v8227_v7, %v9664_v5  ;;  %v8251_v22 = vpop.f32.mrb[35].mxu1  ;;  %8549 = vmatprep.subr.bf16.mxu1 %v9157_v14  ;;  %v9161_v5 = vld [vmem:[#allocation2 + $0xff0] sm:$0xff]   ;;  %v355_v11 = vrot.slane %v9691_v21, %v9403_v33  ;;  %v363_v16 = vrot.slane %v9691_v21, %v9407_v38  ;;  %v9191_v31 = vld [vmem:[#allocation2 + $0x10a8] sm:$0xff]  }
 0x231   :  { %8528 = vmatpush3.bf16.msra.mxu0 %v9158_v20  ;;  %v9190_v22 = vld [vmem:[#allocation2 + $0x1028] sm:$0xff]  }
 0x232   :  { %v9688_v1 = vadd.f32 %v8249_v13, %v6498_v12  ;;  %8529 = vmatprep.subr.bf16.mxu0 %v9160_v15  ;;  %v359_v12 = vrot.slane %v9691_v21, %v9405_v35  ;;  %v652_v15 = vcombine.low %v351_v10, %v355_v11  ;;  %v9192_v35 = vld [vmem:[#allocation2 + $0x1070] sm:$0xff]   ;;  %v9215_v10 = vld [vmem:[#allocation2 + $0x1198] sm:$0xff]   ;;  %v73_v11 = vld [vmem:[%s9739_s0 + $0x88] sm:$0xff] }
 0x233   :  { %8550 = vmatpush3.bf16.msra.mxu1 %v9159_v24 }
 0x234   :  { %8551 = vmatprep.subr.bf16.mxu1 %v9161_v5  ;;  %v653_v33 = vcombine.low %v359_v12, %v363_v16  ;;  %v660_v24 = vrot.slane %v652_v15, %v9409_v42  ;;  %v9193_v5 = vld [vmem:[#allocation2 + $0x10f0] sm:$0xff]   ;;  %v9217_v12 = vld [vmem:[#allocation2 + $0x11e0] sm:$0xff]  }
 0x235   :  { %8530 = vmatpush3.bf16.msra.mxu0 %v9162_v28  ;;  %v9196_v28 = vld [vmem:[#allocation2 + $0x1078] sm:$0xff]   ;;  %v9218_v16 = vld [vmem:[#allocation2 + $0x1120] sm:$0xff]  }
 0x236   :  { %8531 = vmatprep.subr.bf16.mxu0 %v9164_v29  ;;  %v667_v38 = vrot.slane %v653_v33, %v9409_v42  ;;  %v9195_v29 = vld [vmem:[#allocation2 + $0x10b0] sm:$0xff]  }
 0x237   :  { %8552 = vmatpush3.bf16.msra.mxu1 %v9163_v32  ;;  %v9197_v32 = vld [vmem:[#allocation2 + $0x10f8] sm:$0xff]  }
 0x238   :  { %8553 = vmatprep.subr.bf16.mxu1 %v9165_v34  ;;  %v668_v26 = vcombine.low %v660_v24, %v667_v38  ;;  %v9198_v34 = vld [vmem:[#allocation2 + $0x1038] sm:$0xff]   ;;  %v9221_v38 = vld [vmem:[#allocation2 + $0x11e8] sm:$0xff]  }
 0x239   :  { %8532 = vmatpush3.bf16.msra.mxu0 %v9166_v36 }
 0x23a   :  { %8561 = vmatprep.subr.bf16.mxu0 %v9168_v27  ;;  %v9200_v27 = vld [vmem:[#allocation2 + $0x1140] sm:$0xff]  }
 0x23b   :  { %8554 = vmatpush3.bf16.msra.mxu1 %v9167_v37  ;;  %v9199_v37 = vld [vmem:[#allocation2 + $0x10b8] sm:$0xff]  }
 0x23c   :  { %7056 = vmatmul.mubr.bf16.vlgmr.msra.gmra.mrb[60].mxu0 %v1196_v39  ;;  %8583 = vmatprep.subr.bf16.mxu1 %v9169_v41 }
 0x23d   :  { %8562 = vmatpush3.bf16.msra.mxu0 %v9170_v43  ;;  %v9201_v43 = vld [vmem:[#allocation2 + $0x11c0] sm:$0xff]  }
 0x23e   :  { %7096 = vmatmul.mubr.bf16.vlgmr.msra.gmra.mrb[60].mxu1 %v1198_v45  ;;  %8563 = vmatprep.subr.bf16.mxu0 %v9172_v46 }
 0x23f   :  { %8584 = vmatpush3.bf16.msra.mxu1 %v9171_v40  ;;  %v367_v40 = vrot.slane %v9691_v21, %v9420_v57 }
 0x240   :  { %8585 = vmatprep.subr.bf16.mxu1 %v9173_v44 }
 0x241   :  { %8564 = vmatpush3.bf16.msra.mxu0 %v9174_v47  ;;  %v371_v47 = vrot.slane %v9691_v21, %v9422_v58 }
 0x242   :  { %8565 = vmatprep.subr.bf16.mxu0 %v9176_v48  ;;  %v375_v48 = vrot.slane %v9691_v21, %v9425_v61  ;;  %v9206_v61 = vld [vmem:[#allocation2 + $0x1108] sm:$0xff]  }
 0x243   :  { %8586 = vmatpush3.bf16.msra.mxu1 %v9175_v49  ;;  %v379_v49 = vrot.slane %v9691_v21, %v9427_v62  ;;  %v9208_v62 = vld [vmem:[#allocation2 + $0x1150] sm:$0xff]   ;;  %v9212_v21 = vld [vmem:[#allocation2 + $0x1158] sm:$0xff]  }
 0x244   :  { %8587 = vmatprep.subr.bf16.mxu1 %v9177_v50 }
 0x245   :  { %8566 = vmatpush3.bf16.msra.mxu0 %v9178_v51  ;;  %v670_v58 = vcombine.low %v375_v48, %v379_v49 }
 0x246   :  { %8567 = vmatprep.subr.bf16.mxu0 %v9180_v52  ;;  %v9202_v52 = vld [vmem:[#allocation2 + $0x1100] sm:$0xff]  }
 0x247   :  { %8588 = vmatpush3.bf16.msra.mxu1 %v9179_v54 }
 0x248   :  { %8589 = vmatprep.subr.bf16.mxu1 %v9181_v55  ;;  %v9204_v55 = vld [vmem:[#allocation2 + $0x1148] sm:$0xff]  }
 0x249   :  { %8568 = vmatpush3.bf16.msra.mxu0 %v9182_v56  ;;  %v9203_v56 = vld [vmem:[#allocation2 + $0x1180] sm:$0xff]  }
 0x24a   :  { %8569 = vmatprep.subr.bf16.mxu0 %v9184_v60  ;;  %v9205_v60 = vld [vmem:[#allocation2 + $0x11c8] sm:$0xff]  }
 0x24b   :  { %8590 = vmatpush3.bf16.msra.mxu1 %v9183_v63  ;;  %v669_v63 = vcombine.low %v367_v40, %v371_v47  ;;  %v9229_v40 = vld [vmem:[#allocation2 + $0x11f8] sm:$0xff]  }
 0x24c   :  { %v8269_v3 = vpop.f32.mrb[36].mxu0  ;;  %8591 = vmatprep.subr.bf16.mxu1 %v9185_v0  ;;  %v9207_v0 = vld [vmem:[#allocation2 + $0x1188] sm:$0xff]  }
 0x24d   :  { %v8270_v59 = vpop.f32.mrb[37].mxu0  ;;  %v8291_v6 = vpop.f32.mrb[36].mxu1  ;;  %8570 = vmatpush3.bf16.msra.mxu0 %v9186_v53  ;;  %v9209_v53 = vld [vmem:[#allocation2 + $0x11d0] sm:$0xff]  }
 0x24e   :  { %v8271_v7 = vadd.f32 %v8270_v59, %v8269_v3  ;;  %v8272_v9 = vpop.f32.mrb[38].mxu0  ;;  %v8292_v13 = vpop.f32.mrb[37].mxu1  ;;  %8571 = vmatprep.subr.bf16.mxu0 %v9188_v8  ;;  %v677_v3 = vrot.slane %v669_v63, %v9409_v42  ;;  %v9210_v59 = vld [vmem:[#allocation2 + $0x1110] sm:$0xff]  }
 0x24f   :  { %v8273_v14 = vpop.f32.mrb[39].mxu0  ;;  %v8293_v19 = vadd.f32 %v8292_v13, %v8291_v6  ;;  %v8294_v20 = vpop.f32.mrb[38].mxu1  ;;  %8592 = vmatpush3.bf16.msra.mxu1 %v9187_v4  ;;  %v684_v4 = vrot.slane %v670_v58, %v9409_v42  ;;  %v9211_v6 = vld [vmem:[#allocation2 + $0x1190] sm:$0xff]   ;;  %v9216_v9 = vld [vmem:[#allocation2 + $0x1160] sm:$0xff]  }
 0x250   :  { %v6578_v18 = vadd.f32 %v8271_v7, %v9688_v1  ;;  %v8295_v17 = vpop.f32.mrb[39].mxu1  ;;  %8593 = vmatprep.subr.bf16.mxu1 %v9189_v2  ;;  %v72_v1 = vld [vmem:[%s9739_s0 + $0x80] sm:$0xff]  ;;  %v9213_v7 = vld [vmem:[#allocation2 + $0x11d8] sm:$0xff]   ;;  %s9332_s0 = smov [#allocation8]  }
 0x251   :  { %8572 = vmatpush3.bf16.msra.mxu0 %v9190_v22  ;;  %v720_v30 = vadd.f32 %v668_v26, %v72_v1  ;;  %v685_v8 = vcombine.low %v677_v3, %v684_v4  ;;  %v9214_v2 = vld [vmem:[#allocation2 + $0x1118] sm:$0xff]   ;;  %v9220_v22 = vld [vmem:[#allocation2 + $0x1168] sm:$0xff]   ;;  %v9219_v17 = vld [vmem:[#allocation2 + $0x11a0] sm:$0xff]   ;;  %s7270_s6 = sshll.u32 %s9332_s0, 4  ;;  %s7271_s6 = int_to_ptr.vmem [resolvable:$true] %s7270_s6 }
 0x252   :  { %v9702_v23 = vadd.f32 %v8293_v19, %v6578_v18  ;;  %8573 = vmatprep.subr.bf16.mxu0 %v9192_v35  ;;  %s9298_s7 = scalar_lea.vmem %s7271_s6, 32  ;;  %p9303_p11 = scmp.lt.s32.totalorder %s7271_s6, %s7271_s6 }
 0x253   :  { %8594 = vmatpush3.bf16.msra.mxu1 %v9191_v31  ;;  %v738_v36 = vmax.f32 %v720_v30, 0.0  ;;  %v721_v14 = vadd.f32 %v685_v8, %v73_v11  ;;  %p9299_p10 = scmp.ne.s32.totalorder %s7271_s6, %s9298_s7  ;;  %p9304_p12 = scmp.lt.s32.totalorder %s9298_s7, %s9298_s7 }
 0x254   :  { %8595 = vmatprep.subr.bf16.mxu1 %v9193_v5 }
 0x255   :  { %8574 = vmatpush3.bf16.msra.mxu0 %v9194_v25  ;;  %v1037_v39 = vrot.slane %v738_v36, %v9409_v42  ;;  %v1030_v41 = vcombine.high %v738_v36, %v738_v36  ;;  %v739_v31 = vmax.f32 %v721_v14, 0.0  ;;  %p9305_p13 = por %p9304_p12, %p9303_p11 }
 0x256   :  { %8575 = vmatprep.subr.bf16.mxu0 %v9196_v28  ;;  %v9222_v28 = vld [vmem:[#allocation2 + $0x1128] sm:$0xff]  }
 0x257   :  { %8596 = vmatpush3.bf16.msra.mxu1 %v9195_v29  ;;  %v1045_v45 = vcombine.high %v1037_v39, %v1037_v39  ;;  %v1044_v46 = vrot.slane %v1030_v41, %v9409_v42  ;;  %v1200_v44 = vpack.c.bf16 %v1037_v39, %v1037_v39  ;;  %v1054_v25 = vrot.slane %v739_v31, %v9409_v42  ;;  %v9226_v41 = vld [vmem:[#allocation2 + $0x1130] sm:$0xff]   ;;  %p9306_p0 = pnand %p9305_p13, %p9299_p10 }
 0x258   :  { %8597 = vmatprep.subr.bf16.mxu1 %v9197_v32  ;;  %v1047_v26 = vcombine.high %v739_v31, %v739_v31  ;;  %v9224_v32 = vld [vmem:[#allocation2 + $0x1170] sm:$0xff]  }
 0x259   :  { %8576 = vmatpush3.bf16.msra.mxu0 %v9198_v34  ;;  %v1201_v50 = vpack.c.bf16 %v1045_v45, %v1045_v45  ;;  %v1046_v51 = vcombine.high %v1044_v46, %v1044_v46  ;;  %v1202_v54 = vpack.c.bf16 %v1044_v46, %v1044_v46  ;;  %v1062_v34 = vcombine.high %v1054_v25, %v1054_v25  ;;  %v9227_v46 = vld [vmem:[#allocation2 + $0x11b0] sm:$0xff]  }
 0x25a   :  { %8605 = vmatprep.subr.bf16.mxu0 %v9200_v27  ;;  %v1061_v36 = vrot.slane %v1047_v26, %v9409_v42  ;;  %v9223_v27 = vld [vmem:[#allocation2 + $0x11a8] sm:$0xff]   ;;  %v9231_v42 = vld [vmem:[#allocation2 + $0x11b8] sm:$0xff]   ;;  %v1204_v47 = vpack.c.bf16 %v1054_v25, %v1054_v25 }
 0x25b   :  { %8598 = vmatpush3.bf16.msra.mxu1 %v9199_v37  ;;  %7135 = vmatprep.mubr.bf16.mxu0 %v1201_v50  ;;  %v1203_v57 = vpack.c.bf16 %v1046_v51, %v1046_v51  ;;  %v9225_v37 = vld [vmem:[#allocation2 + $0x11f0] sm:$0xff]  }
 0x25c   :  { %8627 = vmatprep.subr.bf16.mxu1 %v9201_v43  ;;  %7136 = vmatmul.mubr.bf16.vlgmr.msra.gmra.mrb[64].mxu0 %v1200_v44  ;;  %v1063_v39 = vcombine.high %v1061_v36, %v1061_v36  ;;  %v9228_v43 = vld [vmem:[#allocation2 + $0x1178] sm:$0xff]   ;;  %v1206_v48 = vpack.c.bf16 %v1061_v36, %v1061_v36 }
 0x25d   :  { %7175 = vmatprep.mubr.bf16.mxu1 %v1203_v57  ;;  %8606 = vmatpush3.bf16.msra.mxu0 %v9202_v52  ;;  %v9230_v44 = vld [vmem:[#allocation2 + $0x1138] sm:$0xff]  }
 0x25e   :  { %7176 = vmatmul.mubr.bf16.vlgmr.msra.gmra.mrb[64].mxu1 %v1202_v54  ;;  %8607 = vmatprep.subr.bf16.mxu0 %v9204_v55  ;;  %v1207_v45 = vpack.c.bf16 %v1063_v39, %v1063_v39 }
 0x25f   :  { %8628 = vmatpush3.bf16.msra.mxu1 %v9203_v56 }
 0x260   :  { %8629 = vmatprep.subr.bf16.mxu1 %v9205_v60  ;;  %7255 = vmatprep.mubr.bf16.mxu1 %v1207_v45 }
 0x261   :  { %8608 = vmatpush3.bf16.msra.mxu0 %v9206_v61 }
 0x262   :  { %8609 = vmatprep.subr.bf16.mxu0 %v9208_v62 }
 0x263   :  { %8630 = vmatpush3.bf16.msra.mxu1 %v9207_v0 }
 0x264   :  { %8631 = vmatprep.subr.bf16.mxu1 %v9209_v53 }
 0x265   :  { %8610 = vmatpush3.bf16.msra.mxu0 %v9210_v59 }
 0x266   :  { %8611 = vmatprep.subr.bf16.mxu0 %v9212_v21 }
 0x267   :  { %8632 = vmatpush3.bf16.msra.mxu1 %v9211_v6 }
 0x268   :  { %8633 = vmatprep.subr.bf16.mxu1 %v9213_v7 }
 0x269   :  { %8612 = vmatpush3.bf16.msra.mxu0 %v9214_v2 }
 0x26a   :  { %8613 = vmatprep.subr.bf16.mxu0 %v9216_v9 }
 0x26b   :  { %8634 = vmatpush3.bf16.msra.mxu1 %v9215_v10 }
 0x26c   :  { %v8313_v13 = vpop.f32.mrb[40].mxu0  ;;  %8635 = vmatprep.subr.bf16.mxu1 %v9217_v12 }
 0x26d   :  { %v8314_v18 = vpop.f32.mrb[41].mxu0  ;;  %v8335_v19 = vpop.f32.mrb[40].mxu1  ;;  %8614 = vmatpush3.bf16.msra.mxu0 %v9218_v16 }
 0x26e   :  { %v8315_v20 = vadd.f32 %v8314_v18, %v8313_v13  ;;  %v8316_v15 = vpop.f32.mrb[42].mxu0  ;;  %v8336_v33 = vpop.f32.mrb[41].mxu1  ;;  %8615 = vmatprep.subr.bf16.mxu0 %v9220_v22 }
 0x26f   :  { %v8317_v35 = vpop.f32.mrb[43].mxu0  ;;  %v8337_v5 = vadd.f32 %v8336_v33, %v8335_v19  ;;  %v8338_v1 = vpop.f32.mrb[42].mxu1  ;;  %8636 = vmatpush3.bf16.msra.mxu1 %v9219_v17 }
 0x270   :  { %v6658_v24 = vadd.f32 %v8315_v20, %v9702_v23  ;;  %v8339_v29 = vpop.f32.mrb[43].mxu1  ;;  %8637 = vmatprep.subr.bf16.mxu1 %v9221_v38  ;;  %v1205_v23 = vpack.c.bf16 %v1062_v34, %v1062_v34 }
 0x271   :  { %8616 = vmatpush3.bf16.msra.mxu0 %v9222_v28 }
 0x272   :  { %v6698_v30 = vadd.f32 %v8337_v5, %v6658_v24  ;;  %8617 = vmatprep.subr.bf16.mxu0 %v9224_v32  ;;  %7215 = vmatprep.mubr.bf16.mxu0 %v1205_v23 }
 0x273   :  { %8638 = vmatpush3.bf16.msra.mxu1 %v9223_v27 }
 0x274   :  { %8639 = vmatprep.subr.bf16.mxu1 %v9225_v37 }
 0x275   :  { %8618 = vmatpush3.bf16.msra.mxu0 %v9226_v41 }
 0x276   :  { %8619 = vmatprep.subr.bf16.mxu0 %v9228_v43 }
 0x277   :  { %8640 = vmatpush3.bf16.msra.mxu1 %v9227_v46 }
 0x278   :  { %8641 = vmatprep.subr.bf16.mxu1 %v9229_v40 }
 0x279   :  { %8620 = vmatpush3.bf16.msra.mxu0 %v9230_v44 }
 0x27b   :  { %8642 = vmatpush3.bf16.msra.mxu1 %v9231_v42 }
 0x27c   :  { %7216 = vmatmul.mubr.bf16.vlgmr.msra.gmra.mrb[68].mxu0 %v1204_v47 }
 0x27e   :  { %7256 = vmatmul.mubr.bf16.vlgmr.msra.gmra.mrb[68].mxu1 %v1206_v48 }
 0x28c   :  { %v8357_v49 = vpop.f32.mrb[44].mxu0 }
 0x28d   :  { %v8358_v50 = vpop.f32.mrb[45].mxu0  ;;  %v8379_v51 = vpop.f32.mrb[44].mxu1 }
 0x28e   :  { %v8359_v52 = vadd.f32 %v8358_v50, %v8357_v49  ;;  %v8360_v54 = vpop.f32.mrb[46].mxu0  ;;  %v8380_v55 = vpop.f32.mrb[45].mxu1 }
 0x28f   :  { %v8361_v57 = vpop.f32.mrb[47].mxu0  ;;  %v8381_v60 = vadd.f32 %v8380_v55, %v8379_v51  ;;  %v8382_v63 = vpop.f32.mrb[46].mxu1 }
 0x290   :  { %v6738_v56 = vadd.f32 %v8359_v52, %v6698_v30  ;;  %v8383_v58 = vpop.f32.mrb[47].mxu1 }
 0x292   :  { %v6778_v61 = vadd.f32 %v8381_v60, %v6738_v56 }
 0x2ac   :  { %v8401_v62 = vpop.f32.mrb[48].mxu0 }
 0x2ad   :  { %v8402_v0 = vpop.f32.mrb[49].mxu0  ;;  %v8423_v53 = vpop.f32.mrb[48].mxu1 }
 0x2ae   :  { %v8403_v3 = vadd.f32 %v8402_v0, %v8401_v62  ;;  %v8404_v4 = vpop.f32.mrb[50].mxu0  ;;  %v8424_v59 = vpop.f32.mrb[49].mxu1 }
 0x2af   :  { %v8405_v21 = vpop.f32.mrb[51].mxu0  ;;  %v8425_v7 = vadd.f32 %v8424_v59, %v8423_v53  ;;  %v8426_v8 = vpop.f32.mrb[50].mxu1 }
 0x2b0   :  { %v6818_v6 = vadd.f32 %v8403_v3, %v6778_v61  ;;  %v8427_v2 = vpop.f32.mrb[51].mxu1 }
 0x2b2   :  { %v6858_v9 = vadd.f32 %v8425_v7, %v6818_v6 }
 0x2cc   :  { %v8445_v10 = vpop.f32.mrb[52].mxu0 }
 0x2cd   :  { %v8446_v11 = vpop.f32.mrb[53].mxu0  ;;  %v8467_v12 = vpop.f32.mrb[52].mxu1 }
 0x2ce   :  { %v8447_v13 = vadd.f32 %v8446_v11, %v8445_v10  ;;  %v8448_v14 = vpop.f32.mrb[54].mxu0  ;;  %v8468_v16 = vpop.f32.mrb[53].mxu1 }
 0x2cf   :  { %v8449_v18 = vpop.f32.mrb[55].mxu0  ;;  %v8469_v20 = vadd.f32 %v8468_v16, %v8467_v12  ;;  %v8470_v22 = vpop.f32.mrb[54].mxu1 }
 0x2d0   :  { %v6898_v19 = vadd.f32 %v8447_v13, %v6858_v9  ;;  %v8471_v15 = vpop.f32.mrb[55].mxu1 }
 0x2d2   :  { %v6938_v31 = vadd.f32 %v8469_v20, %v6898_v19 }
 0x2ef   :  { %v8489_v17 = vpop.f32.mrb[56].mxu0 }
 0x2f0   :  { %v8490_v33 = vpop.f32.mrb[57].mxu0 }
 0x2f1   :  { %v8511_v35 = vpop.f32.mrb[56].mxu1  ;;  %v8491_v24 = vadd.f32 %v8490_v33, %v8489_v17  ;;  %v8492_v5 = vpop.f32.mrb[58].mxu0 }
 0x2f2   :  { %v8512_v38 = vpop.f32.mrb[57].mxu1  ;;  %v8493_v1 = vpop.f32.mrb[59].mxu0 }
 0x2f3   :  { %v6978_v25 = vadd.f32 %v8491_v24, %v6938_v31  ;;  %v8513_v26 = vadd.f32 %v8512_v38, %v8511_v35  ;;  %v8514_v28 = vpop.f32.mrb[58].mxu1 }
 0x2f4   :  { %v8515_v29 = vpop.f32.mrb[59].mxu1 }
 0x2f5   :  { %v7018_v30 = vadd.f32 %v8513_v26, %v6978_v25 }
 0x30f   :  { %v8533_v32 = vpop.f32.mrb[60].mxu0 }
 0x310   :  { %v8534_v34 = vpop.f32.mrb[61].mxu0 }
 0x311   :  { %v8555_v36 = vpop.f32.mrb[60].mxu1  ;;  %v8535_v27 = vadd.f32 %v8534_v34, %v8533_v32  ;;  %v8536_v37 = vpop.f32.mrb[62].mxu0 }
 0x312   :  { %v8556_v23 = vpop.f32.mrb[61].mxu1  ;;  %v8537_v39 = vpop.f32.mrb[63].mxu0 }
 0x313   :  { %v7058_v41 = vadd.f32 %v8535_v27, %v7018_v30  ;;  %v8557_v43 = vadd.f32 %v8556_v23, %v8555_v36  ;;  %v8558_v45 = vpop.f32.mrb[62].mxu1 }
 0x314   :  { %v8559_v46 = vpop.f32.mrb[63].mxu1 }
 0x315   :  { %v7098_v40 = vadd.f32 %v8557_v43, %v7058_v41 }
 0x32f   :  { %v8577_v44 = vpop.f32.mrb[64].mxu0 }
 0x330   :  { %v8578_v42 = vpop.f32.mrb[65].mxu0 }
 0x331   :  { %v8599_v47 = vpop.f32.mrb[64].mxu1  ;;  %v8579_v48 = vadd.f32 %v8578_v42, %v8577_v44  ;;  %v8580_v49 = vpop.f32.mrb[66].mxu0 }
 0x332   :  { %v8600_v50 = vpop.f32.mrb[65].mxu1  ;;  %v8581_v51 = vpop.f32.mrb[67].mxu0 }
 0x333   :  { %v7138_v52 = vadd.f32 %v8579_v48, %v7098_v40  ;;  %v8601_v54 = vadd.f32 %v8600_v50, %v8599_v47  ;;  %v8602_v55 = vpop.f32.mrb[66].mxu1 }
 0x334   :  { %v8603_v57 = vpop.f32.mrb[67].mxu1 }
 0x335   :  { %v7178_v56 = vadd.f32 %v8601_v54, %v7138_v52 }
 0x34f   :  { %v8621_v60 = vpop.f32.mrb[68].mxu0 }
 0x350   :  { %v8622_v63 = vpop.f32.mrb[69].mxu0 }
 0x351   :  { %v8643_v58 = vpop.f32.mrb[68].mxu1  ;;  %v8623_v61 = vadd.f32 %v8622_v63, %v8621_v60  ;;  %v8624_v62 = vpop.f32.mrb[70].mxu0 }
 0x352   :  { %v8644_v0 = vpop.f32.mrb[69].mxu1  ;;  %v8625_v53 = vpop.f32.mrb[71].mxu0 }
 0x353   :  { %v7218_v3 = vadd.f32 %v8623_v61, %v7178_v56  ;;  %v8645_v4 = vadd.f32 %v8644_v0, %v8643_v58  ;;  %v8646_v59 = vpop.f32.mrb[70].mxu1 }
 0x354   :  { %v8647_v21 = vpop.f32.mrb[71].mxu1 }
 0x355   :  { %v7258_v6 = vadd.f32 %v8645_v4, %v7218_v3 }
 0x357   :  { %7263 = vst [vmem:[#allocation8] sm:$0x3] %v7258_v6 }
 0x358   :  { %9309 = shalt.err (!%p9306_p0)
}
 0x359   :  { %s9310_s10 = scalar_lea.hbm %s9743_s4, 32 }
 0x35a   :  { %p9311_p1 = scmp.ne.s32.totalorder %s9743_s4, %s9310_s10  ;;  %p9314_p2 = scmp.lt.u32.totalorder %s9310_s10, %s9743_s4 }
 0x35c   :  { %p9316_p3 = pnand %p9314_p2, %p9311_p1 }
 0x35e   :  { %9319 = shalt.err (!%p9316_p3)
}
 0x35f   :  { %7273 = dma.vmem_to_hbm [thread:$0]  %s7271_s6, 32, %s9743_s4, [#allocation4]  }
 0x360   :  { %9324 = dma.done.wait [#allocation4], 32  }
 0x361   :  { %9325 = vsyncadd [#allocation4], 4294967264 }
 0x362   :  { %7277 = vsyncpa [#allocation3], 1 }
 0x363   :  { %7278 = vsyncpa [#allocation6], 1 }
 0x364   :  { %7279 = vsyncpa [#allocation4], 1 }

</bundles_post_ra>
